<compile_context>
chip_gen: v7x
topology: tpu7x:2x2x1
jax: 0.10.0
libtpu: 0.0.40
codegen_flags: <defaults>
</compile_context>

<pallas_src>
import functools

import jax
import jax.numpy as jnp
from jax.experimental import pallas as pl
from jax.experimental.pallas import tpu as pltpu


def _recognizer_kernel(x_ref, w1t_ref, b1_ref, w2p_ref, b2p_ref,
                       logits_ref, acc_ref, *, inv_hw):
    # x_ref    : (Np, C, HWT)     — one HW lane tile, HW on lanes
    # w1t_ref  : (hidden, C)      — backbone weight, transposed
    # b1_ref   : (hidden, 1)      — backbone bias (per hidden channel)
    # w2p_ref  : (hidden, NCP)    — cls weight, lane-padded to 128
    # b2p_ref  : (1, NCP)         — cls bias, lane-padded
    # logits_ref : (Np, NCP)      — lane-/sublane-dense output slab
    # acc_ref  : (Np, hidden) f32 — fused-pool accumulator (VMEM scratch)
    k = pl.program_id(0)

    @pl.when(k == 0)
    def _():
        acc_ref[...] = jnp.zeros_like(acc_ref)

    x = x_ref[...]                                    # (Np, C, HWT) f32
    w1t = w1t_ref[...]                                # (hidden, C)
    b1 = b1_ref[...]                                  # (hidden, 1)
    num_ch = x.shape[1]

    # backbone 1x1 conv as C broadcast-FMA passes on the VPU (K=C is tiny,
    # skip the MXU): h[n, j, e] = sum_c w1[c, j] * x[n, c, e] + b1[j]
    h = x[:, 0:1, :] * w1t[:, 0:1][None]              # (Np, hidden, HWT)
    for c in range(1, num_ch):                        # static unroll, C-1 FMAs
        h = h + x[:, c:c + 1, :] * w1t[:, c:c + 1][None]
    h = jnp.maximum(h + b1[None], 0.0)                # bias + ReLU

    # fused spatial pool: lane-axis sum of this tile into the accumulator
    acc_ref[...] += jnp.sum(h, axis=-1)               # (Np, hidden)

    @pl.when(k == pl.num_programs(0) - 1)
    def _():
        pooled = acc_ref[...] * inv_hw                # mean over HW
        logits_ref[...] = (jnp.dot(pooled, w2p_ref[...],
                                   preferred_element_type=jnp.float32)
                           + b2p_ref[...])            # (Np, NCP)


def _pick_hw_tile(hw):
    """Largest multiple-of-128 tile (<=2048) that divides HW; else full HW."""
    if hw % 128 != 0:
        # TODO(synk): add in-kernel lane masking for HW not a multiple of 128;
        # fall back to a single full-extent tile (valid BlockSpec).
        return hw
    for t in (2048, 1024, 512, 256, 128):
        if hw % t == 0:
            return t
    return hw


def _run_recognizer(x_nchw, w1t, b1c, w2p, b2p, num_classes):
    n, c, hgt, wid = x_nchw.shape
    hw = hgt * wid
    hidden = w1t.shape[0]
    nc_pad = w2p.shape[1]

    # NCHW -> (N, C, HW): free reshape, no transpose / HBM round trip.
    x = x_nchw.reshape(n, c, hw).astype(jnp.float32)

    # Pad batch to a multiple of 8 so the output block is sublane-dense and
    # the cls-head MXU dot has M >= 8.  Padded rows are sliced off at the end.
    n_pad = max(8, pl.cdiv(n, 8) * 8)
    if n_pad != n:
        x = jnp.pad(x, ((0, n_pad - n), (0, 0), (0, 0)))

    # HW lane tiling: inner reduction grid axis ("arbitrary", last axis).
    hw_tile = _pick_hw_tile(hw)
    grid_hw = hw // hw_tile

    kernel = functools.partial(_recognizer_kernel, inv_hw=1.0 / hw)

    logits_pad = pl.pallas_call(
        kernel,
        out_shape=jax.ShapeDtypeStruct((n_pad, nc_pad), jnp.float32),
        grid_spec=pltpu.PrefetchScalarGridSpec(
            num_scalar_prefetch=0,
            grid=(grid_hw,),
            in_specs=[
                pl.BlockSpec((n_pad, c, hw_tile), lambda k: (0, 0, k)),
                pl.BlockSpec((hidden, c), lambda k: (0, 0)),
                pl.BlockSpec((hidden, 1), lambda k: (0, 0)),
                pl.BlockSpec((hidden, nc_pad), lambda k: (0, 0)),
                pl.BlockSpec((1, nc_pad), lambda k: (0, 0)),
            ],
            out_specs=pl.BlockSpec((n_pad, nc_pad), lambda k: (0, 0)),
            scratch_shapes=[pltpu.VMEM((n_pad, hidden), jnp.float32)],
        ),
        compiler_params=pltpu.CompilerParams(
            dimension_semantics=("arbitrary",),   # reduction axis (last/only)
            vmem_limit_bytes=64 << 20),
    )(x, w1t, b1c, w2p, b2p)

    # strip batch / class padding
    return logits_pad[:n, :num_classes]


class BaseRecognizerPallas:
    """Minimal concrete recognizer mirroring mmaction BaseRecognizer.forward."""

    def __init__(self, in_channels=4, hidden=32, num_classes=8, key=None):
        key = jax.random.PRNGKey(0) if key is None else key
        k1, k2 = jax.random.split(key)
        self.w1 = (jax.random.normal(k1, (in_channels, hidden), jnp.float32)
                   * 0.1)
        self.b1 = jnp.zeros((1, hidden), jnp.float32)
        self.w2 = (jax.random.normal(k2, (hidden, num_classes), jnp.float32)
                   * 0.1)
        self.b2 = jnp.zeros((1, num_classes), jnp.float32)
        self.num_classes = num_classes
        self.cls_head = self.w2   # with_cls property analogue
        self.tenon_list = None

        # Host-side weight prep hoisted out of the per-call path (perf review):
        # lane-dense output width (pad num_classes up to a multiple of 128).
        nc_pad = max(128, pl.cdiv(num_classes, 128) * 128)
        self._w1t = self.w1.T.astype(jnp.float32)                   # (hid, C)
        self._b1c = self.b1.reshape(hidden, 1).astype(jnp.float32)  # (hid, 1)
        self._w2p = jnp.pad(self.w2.astype(jnp.float32),
                            ((0, 0), (0, nc_pad - num_classes)))    # (hid,NCP)
        self._b2p = jnp.pad(self.b2.reshape(1, num_classes).astype(jnp.float32),
                            ((0, 0), (0, nc_pad - num_classes)))    # (1, NCP)

    @property
    def with_tenon_list(self):
        return self.tenon_list is not None

    @property
    def with_cls(self):
        return self.cls_head is not None

    def init_weights(self, pretrained=None):
        # TODO(synk): pretrained checkpoint loading has no Pallas equivalent;
        # weights are initialized deterministically in __init__.
        pass

    def _logits(self, img_group):
        return _run_recognizer(img_group, self._w1t, self._b1c,
                               self._w2p, self._b2p, self.num_classes)

    def forward_train(self, num_modalities, img_meta, img_group_0, gt_label):
        logits = self._logits(img_group_0)
        # mean cross-entropy (tiny (N, num_classes) op -> plain JAX glue)
        logz = jax.nn.logsumexp(logits, axis=-1)
        nll = logz - jnp.take_along_axis(logits, gt_label[:, None],
                                         axis=-1)[:, 0]
        return {"loss_cls": jnp.mean(nll)}

    def forward_test(self, num_modalities, img_meta, img_group_0):
        logits = self._logits(img_group_0)
        return jax.nn.softmax(logits, axis=-1)

    def forward(self, num_modalities, img_meta, return_loss=True, **kwargs):
        num_modalities = int(num_modalities[0])
        if return_loss:
            return self.forward_train(num_modalities, img_meta, **kwargs)
        else:
            return self.forward_test(num_modalities, img_meta, **kwargs)


if __name__ == "__main__":
    key = jax.random.PRNGKey(0)
    kx, kl, kw = jax.random.split(key, 3)

    N, C, H, W = 2, 4, 16, 16
    NUM_CLASSES = 8

    x = jax.random.normal(kx, (N, C, H, W), jnp.float32)   # NCHW like PyTorch
    gt_label = jax.random.randint(kl, (N,), 0, NUM_CLASSES)
    img_meta = [{} for _ in range(N)]

    model = BaseRecognizerPallas(in_channels=C, hidden=32,
                                 num_classes=NUM_CLASSES, key=kw)

    # test path (return_loss=False) -> softmax scores
    scores = model.forward(num_modalities=["1"], img_meta=img_meta,
                           return_loss=False, img_group_0=x)
    scores = jax.block_until_ready(scores)
    assert scores.shape == (N, NUM_CLASSES)
    assert jnp.allclose(jnp.sum(scores, axis=-1), 1.0, atol=1e-5)

    # reference check of the kernel logits against plain-JAX forward
    x_nhwc = jnp.transpose(x, (0, 2, 3, 1)).reshape(N, H * W, C)
    h_ref = jnp.maximum(x_nhwc @ model.w1 + model.b1, 0.0)
    logits_ref = h_ref.mean(axis=1) @ model.w2 + model.b2
    scores_ref = jax.nn.softmax(logits_ref, axis=-1)
    assert jnp.allclose(scores, scores_ref, atol=1e-5, rtol=1e-5)

    # train path (return_loss=True) -> loss dict
    losses = model.forward(num_modalities=["1"], img_meta=img_meta,
                           return_loss=True, img_group_0=x, gt_label=gt_label)
    loss = jax.block_until_ready(losses["loss_cls"])
    assert jnp.isfinite(loss)

    print("KERNEL_OK")
</pallas_src>

<mosaic_0001>
module attributes {stable_mosaic.version = 11 : i64} {
  func.func @_recognizer_kernel(%arg0: i32, %arg1: memref<8x4x256xf32, #tpu.memory_space<vmem>>, %arg2: memref<32x4xf32, #tpu.memory_space<vmem>>, %arg3: memref<32x1xf32, #tpu.memory_space<vmem>>, %arg4: memref<32x128xf32, #tpu.memory_space<vmem>>, %arg5: memref<1x128xf32, #tpu.memory_space<vmem>>, %arg6: memref<8x128xf32, #tpu.memory_space<vmem>>, %arg7: memref<8x32xf32, #tpu.memory_space<vmem>>) attributes {dimension_semantics = [#tpu.dimension_semantics<arbitrary>], iteration_bounds = array<i64: 1>, scalar_prefetch = 0 : i64, scratch_operands = 1 : i64, tpu.core_type = #tpu.core_type<tc>, window_params = [{transform_indices = @transform_0, window_bounds = array<i64: 8, 4, 256>}, {pipeline_mode = #tpu.pipeline_mode<synchronous>, transform_indices = @transform_1, window_bounds = array<i64: 32, 4>}, {pipeline_mode = #tpu.pipeline_mode<synchronous>, transform_indices = @transform_2, window_bounds = array<i64: 32, 1>}, {pipeline_mode = #tpu.pipeline_mode<synchronous>, transform_indices = @transform_3, window_bounds = array<i64: 32, 128>}, {pipeline_mode = #tpu.pipeline_mode<synchronous>, transform_indices = @transform_4, window_bounds = array<i64: 1, 128>}, {pipeline_mode = #tpu.pipeline_mode<synchronous>, transform_indices = @transform_5, window_bounds = array<i64: 8, 128>}]} {
    %c0_i32 = arith.constant 0 : i32
    %0 = arith.cmpi eq, %arg0, %c0_i32 : i32
    %1 = arith.extui %0 : i1 to i32
    %c0_i32_0 = arith.constant 0 : i32
    %2 = arith.cmpi ne, %1, %c0_i32_0 : i32
    scf.if %2 {
      %cst_14 = arith.constant 0.000000e+00 : f32
      %45 = vector.broadcast %cst_14 : f32 to vector<8x32xf32>
      %c0_15 = arith.constant 0 : index
      %c0_16 = arith.constant 0 : index
      %46 = vector.load %arg7[%c0_15, %c0_16] : memref<8x32xf32, #tpu.memory_space<vmem>>, vector<8x32xf32>
      tpu.vector_store %arg7[%c0_15, %c0_16], %45 {strides = array<i32>} : memref<8x32xf32, #tpu.memory_space<vmem>>, vector<8x32xf32>,
    } else {
    }
    %c0 = arith.constant 0 : index
    %c0_1 = arith.constant 0 : index
    %c0_2 = arith.constant 0 : index
    %3 = vector.load %arg1[%c0, %c0_1, %c0_2] : memref<8x4x256xf32, #tpu.memory_space<vmem>>, vector<8x4x256xf32>
    %c0_3 = arith.constant 0 : index
    %c0_4 = arith.constant 0 : index
    %4 = vector.load %arg2[%c0_3, %c0_4] : memref<32x4xf32, #tpu.memory_space<vmem>>, vector<32x4xf32>
    %c0_5 = arith.constant 0 : index
    %c0_6 = arith.constant 0 : index
    %5 = vector.load %arg3[%c0_5, %c0_6] : memref<32x1xf32, #tpu.memory_space<vmem>>, vector<32x1xf32>
    %6 = vector.extract_strided_slice %3 {offsets = [0, 0, 0], sizes = [8, 1, 256], strides = [1, 1, 1]} : vector<8x4x256xf32> to vector<8x1x256xf32>
    %7 = vector.extract_strided_slice %4 {offsets = [0, 0], sizes = [32, 1], strides = [1, 1]} : vector<32x4xf32> to vector<32x1xf32>
    %8 = vector.shape_cast %7 : vector<32x1xf32> to vector<1x32x1xf32>
    %9 = vector.broadcast %6 : vector<8x1x256xf32> to vector<8x32x256xf32>
    %10 = vector.broadcast %8 : vector<1x32x1xf32> to vector<8x32x256xf32>
    %11 = arith.mulf %9, %10 : vector<8x32x256xf32>
    %12 = vector.extract_strided_slice %3 {offsets = [0, 1, 0], sizes = [8, 1, 256], strides = [1, 1, 1]} : vector<8x4x256xf32> to vector<8x1x256xf32>
    %13 = vector.extract_strided_slice %4 {offsets = [0, 1], sizes = [32, 1], strides = [1, 1]} : vector<32x4xf32> to vector<32x1xf32>
    %14 = vector.shape_cast %13 : vector<32x1xf32> to vector<1x32x1xf32>
    %15 = vector.broadcast %12 : vector<8x1x256xf32> to vector<8x32x256xf32>
    %16 = vector.broadcast %14 : vector<1x32x1xf32> to vector<8x32x256xf32>
    %17 = arith.mulf %15, %16 : vector<8x32x256xf32>
    %18 = arith.addf %11, %17 : vector<8x32x256xf32>
    %19 = vector.extract_strided_slice %3 {offsets = [0, 2, 0], sizes = [8, 1, 256], strides = [1, 1, 1]} : vector<8x4x256xf32> to vector<8x1x256xf32>
    %20 = vector.extract_strided_slice %4 {offsets = [0, 2], sizes = [32, 1], strides = [1, 1]} : vector<32x4xf32> to vector<32x1xf32>
    %21 = vector.shape_cast %20 : vector<32x1xf32> to vector<1x32x1xf32>
    %22 = vector.broadcast %19 : vector<8x1x256xf32> to vector<8x32x256xf32>
    %23 = vector.broadcast %21 : vector<1x32x1xf32> to vector<8x32x256xf32>
    %24 = arith.mulf %22, %23 : vector<8x32x256xf32>
    %25 = arith.addf %18, %24 : vector<8x32x256xf32>
    %26 = vector.extract_strided_slice %3 {offsets = [0, 3, 0], sizes = [8, 1, 256], strides = [1, 1, 1]} : vector<8x4x256xf32> to vector<8x1x256xf32>
    %27 = vector.extract_strided_slice %4 {offsets = [0, 3], sizes = [32, 1], strides = [1, 1]} : vector<32x4xf32> to vector<32x1xf32>
    %28 = vector.shape_cast %27 : vector<32x1xf32> to vector<1x32x1xf32>
    %29 = vector.broadcast %26 : vector<8x1x256xf32> to vector<8x32x256xf32>
    %30 = vector.broadcast %28 : vector<1x32x1xf32> to vector<8x32x256xf32>
    %31 = arith.mulf %29, %30 : vector<8x32x256xf32>
    %32 = arith.addf %25, %31 : vector<8x32x256xf32>
    %33 = vector.shape_cast %5 : vector<32x1xf32> to vector<1x32x1xf32>
    %34 = vector.broadcast %33 : vector<1x32x1xf32> to vector<8x32x256xf32>
    %35 = arith.addf %32, %34 : vector<8x32x256xf32>
    %cst = arith.constant 0.000000e+00 : f32
    %36 = vector.broadcast %cst : f32 to vector<8x32x256xf32>
    %37 = arith.maximumf %35, %36 : vector<8x32x256xf32>
    %c0_7 = arith.constant 0 : index
    %c0_8 = arith.constant 0 : index
    %38 = vector.load %arg7[%c0_7, %c0_8] : memref<8x32xf32, #tpu.memory_space<vmem>>, vector<8x32xf32>
    %cst_9 = arith.constant dense<0.000000e+00> : vector<8x32xf32>
    %39 = vector.multi_reduction <add>, %37, %cst_9 [2] : vector<8x32x256xf32> to vector<8x32xf32>
    %40 = arith.addf %38, %39 : vector<8x32xf32>
    %c0_10 = arith.constant 0 : index
    %c0_11 = arith.constant 0 : index
    %41 = vector.load %arg7[%c0_10, %c0_11] : memref<8x32xf32, #tpu.memory_space<vmem>>, vector<8x32xf32>
    tpu.vector_store %arg7[%c0_10, %c0_11], %40 {strides = array<i32>} : memref<8x32xf32, #tpu.memory_space<vmem>>, vector<8x32xf32>,
    %c0_i32_12 = arith.constant 0 : i32
    %42 = arith.cmpi eq, %arg0, %c0_i32_12 : i32
    %43 = arith.extui %42 : i1 to i32
    %c0_i32_13 = arith.constant 0 : i32
    %44 = arith.cmpi ne, %43, %c0_i32_13 : i32
    scf.if %44 {
      %c0_14 = arith.constant 0 : index
      %c0_15 = arith.constant 0 : index
      %45 = vector.load %arg7[%c0_14, %c0_15] : memref<8x32xf32, #tpu.memory_space<vmem>>, vector<8x32xf32>
      %cst_16 = arith.constant 3.906250e-03 : f32
      %46 = vector.broadcast %cst_16 : f32 to vector<8x32xf32>
      %47 = arith.mulf %45, %46 : vector<8x32xf32>
      %c0_17 = arith.constant 0 : index
      %c0_18 = arith.constant 0 : index
      %48 = vector.load %arg4[%c0_17, %c0_18] : memref<32x128xf32, #tpu.memory_space<vmem>>, vector<32x128xf32>
      %cst_19 = arith.constant dense<0.000000e+00> : vector<8x128xf32>
      %49 = tpu.matmul %47, %48, %cst_19 {dimension_numbers = #tpu.dot_dimension_numbers<[1], [0], [0], [1], [0, 0, 1, 1], [], []>} : vector<8x32xf32>, vector<32x128xf32>, vector<8x128xf32> -> vector<8x128xf32>
      %c0_20 = arith.constant 0 : index
      %c0_21 = arith.constant 0 : index
      %50 = vector.load %arg5[%c0_20, %c0_21] : memref<1x128xf32, #tpu.memory_space<vmem>>, vector<1x128xf32>
      %51 = vector.broadcast %50 : vector<1x128xf32> to vector<8x128xf32>
      %52 = arith.addf %49, %51 : vector<8x128xf32>
      %c0_22 = arith.constant 0 : index
      %c0_23 = arith.constant 0 : index
      %53 = vector.load %arg6[%c0_22, %c0_23] : memref<8x128xf32, #tpu.memory_space<vmem>>, vector<8x128xf32>
      tpu.vector_store %arg6[%c0_22, %c0_23], %52 {strides = array<i32>} : memref<8x128xf32, #tpu.memory_space<vmem>>, vector<8x128xf32>,
    } else {
    }
    return
  }
  func.func @transform_0(%arg0: i32) -> (i32, i32, i32) {
    %c0_i32 = arith.constant 0 : i32
    %c0_i32_0 = arith.constant 0 : i32
    %c0_i32_1 = arith.constant 0 : i32
    return %c0_i32, %c0_i32_0, %arg0 : i32, i32, i32
  }
  func.func @transform_1(%arg0: i32) -> (i32, i32) {
    %c0_i32 = arith.constant 0 : i32
    %c0_i32_0 = arith.constant 0 : i32
    %c0_i32_1 = arith.constant 0 : i32
    return %c0_i32, %c0_i32_0 : i32, i32
  }
  func.func @transform_2(%arg0: i32) -> (i32, i32) {
    %c0_i32 = arith.constant 0 : i32
    %c0_i32_0 = arith.constant 0 : i32
    %c0_i32_1 = arith.constant 0 : i32
    return %c0_i32, %c0_i32_0 : i32, i32
  }
  func.func @transform_3(%arg0: i32) -> (i32, i32) {
    %c0_i32 = arith.constant 0 : i32
    %c0_i32_0 = arith.constant 0 : i32
    %c0_i32_1 = arith.constant 0 : i32
    return %c0_i32, %c0_i32_0 : i32, i32
  }
  func.func @transform_4(%arg0: i32) -> (i32, i32) {
    %c0_i32 = arith.constant 0 : i32
    %c0_i32_0 = arith.constant 0 : i32
    %c0_i32_1 = arith.constant 0 : i32
    return %c0_i32, %c0_i32_0 : i32, i32
  }
  func.func @transform_5(%arg0: i32) -> (i32, i32) {
    %c0_i32 = arith.constant 0 : i32
    %c0_i32_0 = arith.constant 0 : i32
    %c0_i32_1 = arith.constant 0 : i32
    return %c0_i32, %c0_i32_0 : i32, i32
  }
}

</mosaic_0001>

<bundles_post_ra>
// kernel: tpu_custom_call.1
= control target key start
LH: loop header
LB: loop body
LE: loop exit
PB: predicated region body
PF: predicated region fallthrough
CT: control target
= control target key end

     0   :  { %10 = vsyncpa [#allocation4], 0  ;;  %s3303_s0 = inlined_call_operand.hbm [shape: f32[8,4,256], index: 0, kind: input, shape index: {}]   ;;  %s3304_s1 = inlined_call_operand.hbm [shape: f32[32,4], index: 1, kind: input, shape index: {}]   ;;  %s3305_s2 = inlined_call_operand.hbm [shape: f32[32,1], index: 2, kind: input, shape index: {}]   ;;  %s3306_s3 = inlined_call_operand.hbm [shape: f32[32,128], index: 3, kind: input, shape index: {}]   ;;  %s3307_s4 = inlined_call_operand.hbm [shape: f32[1,128], index: 4, kind: input, shape index: {}]   ;;  %s3308_s5 = inlined_call_operand.hbm [shape: f32[8,128], index: 5, kind: output, shape index: {}]  }
   0x1   :  { %11 = vsyncpa [#allocation7], 0 }
   0x2   :  { %12 = vsyncpa [#allocation10], 0 }
   0x3   :  { %13 = vsyncpa [#allocation5], 0  ;;  %s1958_s18 = smov [#allocation6]   ;;  %s1959_s20 = smov [#allocation9]  }
   0x4   :  { %s31_s19 = sshll.u32 %s1958_s18, 4  ;;  %s55_s21 = sshll.u32 %s1959_s20, 4  ;;  %s32_s19 = int_to_ptr.vmem [resolvable:$true] %s31_s19  ;;  %s2003_s21 = int_to_ptr.vmem [resolvable:$true] %s55_s21 }
   0x5   :  { %s1818_s24 = scalar_lea.hbm %s3304_s1, 512 }
   0x6   :  { %p1819_p0 = scmp.ne.s32.totalorder %s3304_s1, %s1818_s24  ;;  %p1822_p1 = scmp.lt.u32.totalorder %s1818_s24, %s3304_s1 }
   0x8   :  { %p1824_p2 = pnand %p1822_p1, %p1819_p0 }
   0xa   :  { %1827 = shalt.err (!%p1824_p2)
}
   0xb   :  { %s1828_s29 = scalar_lea.vmem %s32_s19, 512  ;;  %p1833_p4 = scmp.lt.s32.totalorder %s32_s19, %s32_s19 }
   0xc   :  { %p1829_p3 = scmp.ne.s32.totalorder %s32_s19, %s1828_s29  ;;  %p1834_p5 = scmp.lt.s32.totalorder %s1828_s29, %s1828_s29 }
   0xe   :  { %p1835_p6 = por %p1834_p5, %p1833_p4 }
  0x10   :  { %p1836_p7 = pnand %p1835_p6, %p1829_p3 }
  0x12   :  { %1839 = shalt.err (!%p1836_p7)
}
  0x13   :  { %s1960_s30 = smov 128   ;;  %s1961_s6 = smov 8  }
  0x14   :  { %37 = dma.hbm_to_vmem [thread:$0]  %s3304_s1, 512, %s32_s19, [#allocation7], %s1960_s30, %s1960_s30, %s1961_s6  }
  0x15   :  { %s1840_s11 = scalar_lea.hbm %s3306_s3, 512 }
  0x16   :  { %p1841_p8 = scmp.ne.s32.totalorder %s3306_s3, %s1840_s11  ;;  %p1844_p9 = scmp.lt.u32.totalorder %s1840_s11, %s3306_s3 }
  0x18   :  { %p1846_p10 = pnand %p1844_p9, %p1841_p8 }
  0x1a   :  { %1849 = shalt.err (!%p1846_p10)
}
  0x1b   :  { %s1850_s16 = scalar_lea.vmem %s2003_s21, 512  ;;  %p1855_p12 = scmp.lt.s32.totalorder %s2003_s21, %s2003_s21 }
  0x1c   :  { %p1851_p11 = scmp.ne.s32.totalorder %s2003_s21, %s1850_s16  ;;  %p1856_p13 = scmp.lt.s32.totalorder %s1850_s16, %s1850_s16 }
  0x1e   :  { %p1857_p0 = por %p1856_p13, %p1855_p12 }
  0x20   :  { %p1858_p1 = pnand %p1857_p0, %p1851_p11 }
  0x22   :  { %1861 = shalt.err (!%p1858_p1)
}
  0x23   :  { %61 = dma.hbm_to_vmem [thread:$0]  %s3306_s3, 512, %s2003_s21, [#allocation10], %s1960_s30, %s1960_s30, %s1961_s6  }
  0x24   :  { %s1962_s18 = smov [#allocation3]   ;;  %s1963_s20 = smov [#allocation8]  }
  0x25   :  { %s19_s19 = sshll.u32 %s1962_s18, 4  ;;  %s43_s22 = sshll.u32 %s1963_s20, 4  ;;  %s20_s19 = int_to_ptr.vmem [resolvable:$true] %s19_s19  ;;  %s2040_s22 = int_to_ptr.vmem [resolvable:$true] %s43_s22 }
  0x26   :  { %s1862_s25 = scalar_lea.hbm %s3303_s0, 1024 }
  0x27   :  { %p1863_p2 = scmp.ne.s32.totalorder %s3303_s0, %s1862_s25  ;;  %p1866_p3 = scmp.lt.u32.totalorder %s1862_s25, %s3303_s0 }
  0x29   :  { %p1868_p4 = pnand %p1866_p3, %p1863_p2 }
  0x2b   :  { %1871 = shalt.err (!%p1868_p4)
}
  0x2c   :  { %s1872_s3 = scalar_lea.vmem %s20_s19, 1024  ;;  %p1877_p6 = scmp.lt.s32.totalorder %s20_s19, %s20_s19 }
  0x2d   :  { %p1873_p5 = scmp.ne.s32.totalorder %s20_s19, %s1872_s3  ;;  %p1878_p7 = scmp.lt.s32.totalorder %s1872_s3, %s1872_s3 }
  0x2f   :  { %p1879_p8 = por %p1878_p7, %p1877_p6 }
  0x31   :  { %p1880_p9 = pnand %p1879_p8, %p1873_p5 }
  0x33   :  { %1883 = shalt.err (!%p1880_p9)
}
  0x34   :  { %25 = dma.hbm_to_vmem [thread:$0]  %s3303_s0, 1024, %s20_s19, [#allocation4], %s1960_s30, %s1960_s30, %s1961_s6  }
  0x35   :  { %s1884_s10 = scalar_lea.hbm %s3305_s2, 512 }
  0x36   :  { %p1885_p10 = scmp.ne.s32.totalorder %s3305_s2, %s1884_s10  ;;  %p1888_p11 = scmp.lt.u32.totalorder %s1884_s10, %s3305_s2 }
  0x38   :  { %p1890_p12 = pnand %p1888_p11, %p1885_p10 }
  0x3a   :  { %1893 = shalt.err (!%p1890_p12)
}
  0x3b   :  { %s1894_s15 = scalar_lea.vmem %s2040_s22, 512  ;;  %p1899_p0 = scmp.lt.s32.totalorder %s2040_s22, %s2040_s22 }
  0x3c   :  { %p1895_p13 = scmp.ne.s32.totalorder %s2040_s22, %s1894_s15  ;;  %p1900_p1 = scmp.lt.s32.totalorder %s1894_s15, %s1894_s15 }
  0x3e   :  { %p1901_p2 = por %p1900_p1, %p1899_p0 }
  0x40   :  { %p1902_p3 = pnand %p1901_p2, %p1895_p13 }
  0x42   :  { %1905 = shalt.err (!%p1902_p3)
}
  0x43   :  { %49 = dma.hbm_to_vmem [thread:$0]  %s3305_s2, 512, %s2040_s22, [#allocation7], %s1960_s30, %s1960_s30, %s1961_s6  }
  0x44   :  { %s1964_s1 = smov [#allocation11]   ;;  %s1906_s20 = scalar_lea.hbm %s3307_s4, 16 }
  0x45   :  { %s68_s17 = sshll.u32 %s1964_s1, 4  ;;  %p1907_p4 = scmp.ne.s32.totalorder %s3307_s4, %s1906_s20  ;;  %s69_s17 = int_to_ptr.vmem [resolvable:$true] %s68_s17 }
  0x46   :  { %p1910_p5 = scmp.lt.u32.totalorder %s1906_s20, %s3307_s4 }
  0x48   :  { %p1912_p6 = pnand %p1910_p5, %p1907_p4 }
  0x4a   :  { %1915 = shalt.err (!%p1912_p6)
}
  0x4b   :  { %s1916_s27 = scalar_lea.vmem %s69_s17, 16  ;;  %s1920_s2 = scalar_lea.vmem %s69_s17, 32 }
  0x4c   :  { %p1917_p7 = scmp.ne.s32.totalorder %s69_s17, %s1916_s27  ;;  %p1921_p8 = scmp.lt.s32.totalorder %s69_s17, %s69_s17 }
  0x4d   :  { %p1922_p9 = scmp.lt.s32.totalorder %s1920_s2, %s1916_s27 }
  0x4f   :  { %p1923_p10 = por %p1922_p9, %p1921_p8 }
  0x51   :  { %p1924_p11 = pnand %p1923_p10, %p1917_p7 }
  0x53   :  { %1927 = shalt.err (!%p1924_p11)
}
  0x54   :  { %71 = dma.hbm_to_vmem [thread:$0]  %s3307_s4, 16, %s69_s17, [#allocation10]  }
  0x55   :  { %1950 = dma.done.wait [#allocation4], 1024  }
  0x56   :  { %1951 = vsyncadd [#allocation4], 4294966272 }
  0x57   :  { %1952 = dma.done.wait [#allocation7], 1024  }
  0x58   :  { %1953 = vsyncadd [#allocation7], 4294966272 }
  0x59   :  { %1954 = dma.done.wait [#allocation10], 528  }
  0x5a   :  { %1955 = vsyncadd [#allocation10], 4294966768  ;;  %v1965_v0 = vmov 2   ;;  %v1966_v1 = vmov 1   ;;  %v101_v2 = vld [vmem:[#allocation6] sm:$0xff]  ;;  %v104_v3 = vld [vmem:[#allocation6 + $0x18] sm:$0xff]  ;;  %v3309_v12 = vlaneseq }
  0x5b   :  { %1811 = vset.pattern.permute.xlu0 %v1965_v0  ;;  %1810 = vset.pattern.permute.xlu1 %v1966_v1  ;;  %v102_v4 = vld [vmem:[#allocation6 + $0x8] sm:$0xff]  ;;  %v103_v5 = vld [vmem:[#allocation6 + $0x10] sm:$0xff]  ;;  %v1967_v6 = vmov 3   ;;  %v1968_v7 = vmov 0   ;;  %v105_v8 = vld [vmem:[#allocation8] sm:$0xff]  ;;  %vm91_vm0 = vcmask 261120  }
  0x5c   :  { %778 = vperm.xlu0 %1811, %v101_v2   ;;  %490 = vperm.xlu1 %1810, %v101_v2   ;;  %v108_v9 = vld [vmem:[#allocation8 + $0x18] sm:$0xff]  ;;  %v106_v10 = vld [vmem:[#allocation8 + $0x8] sm:$0xff]  ;;  %v107_v11 = vld [vmem:[#allocation8 + $0x10] sm:$0xff]  ;;  %v2090_v13 = vshrl.u32 %v3309_v12, 7  ;;  %vm1971_vm1 = vmmov 0   ;;  %vm1497_vm2 = vcmask 130112  }
  0x5d   :  { %v93_v16 = vld [vmem:[#allocation3] sm:$0xff]  ;;  %v94_v19 = vld [vmem:[#allocation3 + $0x8] sm:$0xff]  ;;  %v95_v20 = vld [vmem:[#allocation3 + $0x10] sm:$0xff]  ;;  %vm1504_vm3 = vcmask 195712   ;;  %vm1511_vm4 = vcmask 261312   ;;  %vm1646_vm5 = vcmask 1041409  }
  0x5e   :  { %3381 = vst [vmem:[#allocation17_spill] sm:$0xff] %v2090_v13  ;;  %v2093_v14 = vsub.s32 1, %v2090_v13  ;;  %v2096_v15 = vsub.s32 5, %v2090_v13  ;;  %v2099_v17 = vsub.s32 2, %v2090_v13  ;;  %v2102_v18 = vsub.s32 6, %v2090_v13  ;;  %v96_v49 = vld [vmem:[#allocation3 + $0x18] sm:$0xff] }
  0x5f   :  { %v2105_v21 = vsub.s32 0, %v2090_v13  ;;  %v2108_v22 = vsub.s32 4, %v2090_v13  ;;  %v2123_v35 = vsub.s32 3, %v2090_v13  ;;  %v2126_v36 = vsub.s32 7, %v2090_v13  ;;  %s1972_s4 = smov [#allocation12]  }
  0x60   :  { %790 = vperm.xlu0 %1811, %v104_v3   ;;  %494 = vperm.xlu1 %1810, %v102_v4   ;;  %3382 = vst [vmem:[#allocation18_spill] sm:$0xff] %v2099_v17  ;;  %3383 = vst [vmem:[#allocation19_spill] sm:$0xff] %v2102_v18  ;;  %v348_v23 = vrot.slane %v93_v16, %v2093_v14  ;;  %v352_v24 = vrot.slane %v93_v16, %v2096_v15  ;;  %vm1648_vm6 = vcmask 1042434   ;;  %vm1650_vm7 = vcmask 1043459   ;;  %s1760_s22 = sshll.u32 %s1972_s4, 4  ;;  %s1761_s22 = int_to_ptr.vmem [resolvable:$true] %s1760_s22 }
  0x61   :  { %v356_v25 = vrot.slane %v94_v19, %v2093_v14  ;;  %v360_v26 = vrot.slane %v94_v19, %v2096_v15  ;;  %v636_v27 = vrot.slane %v93_v16, %v2099_v17  ;;  %v640_v28 = vrot.slane %v93_v16, %v2102_v18  ;;  %3384 = vst [vmem:[#allocation20_spill] sm:$0xff] %v2123_v35  ;;  %s1928_s28 = scalar_lea.vmem %s1761_s22, 128  ;;  %p1933_p13 = scmp.lt.s32.totalorder %s1761_s22, %s1761_s22 }
  0x62   :  { %v364_v29 = vrot.slane %v95_v20, %v2093_v14  ;;  %v368_v30 = vrot.slane %v95_v20, %v2096_v15  ;;  %v644_v31 = vrot.slane %v94_v19, %v2099_v17  ;;  %v648_v32 = vrot.slane %v94_v19, %v2102_v18  ;;  %3385 = vst [vmem:[#allocation21_spill] sm:$0xff] %v2126_v36  ;;  %p1929_p12 = scmp.ne.s32.totalorder %s1761_s22, %s1928_s28  ;;  %p1934_p0 = scmp.lt.s32.totalorder %s1928_s28, %s1928_s28 }
  0x63   :  { %v120_v33 = vrot.slane %v93_v16, %v2105_v21  ;;  %v124_v34 = vrot.slane %v93_v16, %v2108_v22  ;;  %v2129_v37 = vrot.slane %v348_v23, %v2093_v14  ;;  %v2132_v38 = vrot.slane %v352_v24, %v2093_v14 }
  0x64   :  { %1814 = vset.pattern.permute.xlu0 %v1967_v6  ;;  %498 = vperm.xlu1 %1810, %v103_v5   ;;  %v2135_v39 = vrot.slane %v356_v25, %v2093_v14  ;;  %v2138_v40 = vrot.slane %v360_v26, %v2093_v14  ;;  %v2141_v41 = vrot.slane %v636_v27, %v2099_v17  ;;  %vm1652_vm8 = vcmask 1044484   ;;  %p1935_p1 = por %p1934_p0, %p1933_p13 }
  0x65   :  { %1070 = vperm.xlu0 %1814, %v102_v4   ;;  %v2144_v42 = vrot.slane %v640_v28, %v2099_v17  ;;  %v2147_v43 = vrot.slane %v364_v29, %v2093_v14  ;;  %v2150_v44 = vrot.slane %v368_v30, %v2093_v14  ;;  %v128_v45 = vrot.slane %v94_v19, %v2105_v21 }
  0x66   :  { %v132_v46 = vrot.slane %v94_v19, %v2108_v22  ;;  %v2155_v47 = vrot.slane %v644_v31, %v2099_v17  ;;  %v2158_v48 = vrot.slane %v648_v32, %v2099_v17  ;;  %v2161_v50 = vrot.slane %v120_v33, %v2105_v21  ;;  %v98_v31 = vld [vmem:[#allocation3 + $0x28] sm:$0xff]  ;;  %p1936_p2 = pnand %p1935_p1, %p1929_p12 }
  0x67   :  { %v2164_v51 = vrot.slane %v124_v34, %v2105_v21  ;;  %v924_v52 = vrot.slane %v93_v16, %v2123_v35  ;;  %v928_v53 = vrot.slane %v93_v16, %v2126_v36  ;;  %v932_v54 = vrot.slane %v94_v19, %v2123_v35 }
  0x68   :  { %502 = vperm.xlu1 %1810, %v104_v3   ;;  %v936_v55 = vrot.slane %v94_v19, %v2126_v36  ;;  %v652_v56 = vrot.slane %v95_v20, %v2099_v17  ;;  %v656_v57 = vrot.slane %v95_v20, %v2102_v18  ;;  %v136_v58 = vrot.slane %v95_v20, %v2105_v21 }
  0x69   :  { %1815 = vset.pattern.permute.xlu0 %v1968_v7  ;;  %v140_v59 = vrot.slane %v95_v20, %v2108_v22  ;;  %v372_v60 = vrot.slane %v96_v49, %v2093_v14  ;;  %v376_v61 = vrot.slane %v96_v49, %v2096_v15  ;;  %v940_v62 = vrot.slane %v95_v20, %v2123_v35 }
  0x6a   :  { %263 = vperm.xlu0 %1815, %v101_v2   ;;  %v944_v63 = vrot.slane %v95_v20, %v2126_v36  ;;  %v148_v1 = vrot.slane %v96_v49, %v2108_v22  ;;  %v660_v27 = vrot.slane %v96_v49, %v2099_v17  ;;  %v664_v28 = vrot.slane %v96_v49, %v2102_v18 }
  0x6b   :  { %v2208_v16 = vrot.slane %v140_v59, %v2105_v21  ;;  %v2211_v19 = vrot.slane %v372_v60, %v2093_v14  ;;  %v2214_v20 = vrot.slane %v376_v61, %v2093_v14  ;;  %v2217_v23 = vrot.slane %v940_v62, %v2123_v35 }
  0x6c   :  { %1812 = vset.pattern.permute.xlu1 %v1965_v0  ;;  %v144_v0 = vrot.slane %v96_v49, %v2105_v21  ;;  %v2220_v24 = vrot.slane %v944_v63, %v2123_v35  ;;  %v2226_v26 = vrot.slane %v148_v1, %v2105_v21  ;;  %v948_v32 = vrot.slane %v96_v49, %v2123_v35 }
  0x6d   :  { %782 = vperm.xlu1 %1812, %v102_v4   ;;  %3386 = vst [vmem:[#allocation22_spill] sm:$0xff] %v2211_v19  ;;  %3387 = vst [vmem:[#allocation23_spill] sm:$0xff] %v2214_v20  ;;  %v952_v33 = vrot.slane %v96_v49, %v2126_v36  ;;  %v392_v49 = vrot.slane %v98_v31, %v2096_v15  ;;  %v2248_v59 = vrot.slane %v664_v28, %v2099_v17  ;;  %vm1654_vm9 = vcmask 1045509  }
  0x6e   :  { %268 = vperm.xlu0 %1815, %v102_v4   ;;  %v2187_v4 = vrot.slane %v128_v45, %v2105_v21  ;;  %v2223_v25 = vrot.slane %v144_v0, %v2105_v21  ;;  %3389 = vst [vmem:[#allocation25_spill] sm:$0xff] %v2226_v26  ;;  %v2257_v62 = vrot.slane %v948_v32, %v2123_v35  ;;  %vm1656_vm10 = vcmask 1046534  }
  0x6f   :  { %3391 = vst [vmem:[#allocation27_spill] sm:$0xff] %v2248_v59  ;;  %v2260_v63 = vrot.slane %v952_v33, %v2123_v35  ;;  %vm1658_vm11 = vcmask 1047559  }
  0x70   :  { %3388 = vst [vmem:[#allocation24_spill] sm:$0xff] %v2223_v25  ;;  %3394 = vst [vmem:[#allocation30_spill] sm:$0xff] %v2257_v62 }
  0x71   :  { %786 = vperm.xlu1 %1812, %v103_v5   ;;  %3395 = vst [vmem:[#allocation31_spill] sm:$0xff] %v2260_v63 }
  0x72   :  { %273 = vperm.xlu0 %1815, %v103_v5  }
  0x75   :  { %1813 = vset.pattern.permute.xlu1 %v1967_v6  ;;  %v2193_v6 = vrot.slane %v932_v54, %v2123_v35 }
  0x76   :  { %278 = vperm.xlu0 %1815, %v104_v3   ;;  %1066 = vperm.xlu1 %1813, %v101_v2   ;;  %v2181_v2 = vrot.slane %v924_v52, %v2123_v35 }
  0x7a   :  { %1211 = vperm.xlu0 %1815, %v105_v8   ;;  %1074 = vperm.xlu1 %1813, %v103_v5   ;;  %v2190_v5 = vrot.slane %v132_v46, %v2105_v21  ;;  %v2199_v8 = vrot.slane %v652_v56, %v2099_v17  ;;  %v164_v56 = vrot.slane %v98_v31, %v2108_v22 }
  0x7c   :  { %v2284_v33 = vrot.slane %v164_v56, %v2105_v21  ;;  %v968_v56 = vrot.slane %v98_v31, %v2126_v36 }
  0x7e   :  { %1226 = vperm.xlu0 %1815, %v108_v9   ;;  %1078 = vperm.xlu1 %1813, %v104_v3   ;;  %v2184_v3 = vrot.slane %v928_v53, %v2123_v35  ;;  %v2202_v9 = vrot.slane %v656_v57, %v2099_v17  ;;  %v388_v57 = vrot.slane %v98_v31, %v2093_v14 }
  0x7f   :  { %3403 = vst [vmem:[#allocation39_spill] sm:$0xff] %v2284_v33 }
  0x82   :  { %1816 = vset.pattern.permute.xlu1 %v1968_v7  ;;  %v2196_v7 = vrot.slane %v936_v55, %v2123_v35  ;;  %v160_v55 = vrot.slane %v98_v31, %v2105_v21 }
  0x83   :  { %1216 = vperm.xlu1 %1816, %v106_v10   ;;  %v97_v10 = vld [vmem:[#allocation3 + $0x20] sm:$0xff] }
  0x84   :  { %v380_v29 = vrot.slane %v97_v10, %v2093_v14  ;;  %v384_v30 = vrot.slane %v97_v10, %v2096_v15  ;;  %v152_v34 = vrot.slane %v97_v10, %v2105_v21  ;;  %v156_v45 = vrot.slane %v97_v10, %v2108_v22 }
  0x85   :  { %v668_v46 = vrot.slane %v97_v10, %v2099_v17  ;;  %v672_v52 = vrot.slane %v97_v10, %v2102_v18  ;;  %v956_v53 = vrot.slane %v97_v10, %v2123_v35  ;;  %v960_v54 = vrot.slane %v97_v10, %v2126_v36  ;;  %v99_v10 = vld [vmem:[#allocation3 + $0x30] sm:$0xff] }
  0x86   :  { %v2251_v60 = vrot.slane %v380_v29, %v2093_v14  ;;  %v2254_v61 = vrot.slane %v384_v30, %v2093_v14  ;;  %v2263_v0 = vrot.slane %v152_v34, %v2105_v21  ;;  %v2266_v1 = vrot.slane %v156_v45, %v2105_v21 }
  0x87   :  { %1221 = vperm.xlu1 %1816, %v107_v11   ;;  %v2205_v11 = vrot.slane %v136_v58, %v2105_v21  ;;  %v2245_v58 = vrot.slane %v660_v27, %v2099_v17  ;;  %v2269_v27 = vrot.slane %v668_v46, %v2099_v17  ;;  %v2272_v28 = vrot.slane %v672_v52, %v2099_v17  ;;  %v100_v46 = vld [vmem:[#allocation3 + $0x38] sm:$0xff] }
  0x88   :  { %3392 = vst [vmem:[#allocation28_spill] sm:$0xff] %v2251_v60  ;;  %3393 = vst [vmem:[#allocation29_spill] sm:$0xff] %v2254_v61  ;;  %v2275_v29 = vrot.slane %v956_v53, %v2123_v35  ;;  %v2278_v30 = vrot.slane %v960_v54, %v2123_v35  ;;  %v2281_v32 = vrot.slane %v160_v55, %v2105_v21 }
  0x89   :  { %3390 = vst [vmem:[#allocation26_spill] sm:$0xff] %v2245_v58  ;;  %3396 = vst [vmem:[#allocation32_spill] sm:$0xff] %v2263_v0  ;;  %v2287_v34 = vrot.slane %v388_v57, %v2093_v14  ;;  %v2290_v45 = vrot.slane %v392_v49, %v2093_v14  ;;  %v676_v52 = vrot.slane %v98_v31, %v2099_v17 }
  0x8a   :  { %3397 = vst [vmem:[#allocation33_spill] sm:$0xff] %v2266_v1  ;;  %3398 = vst [vmem:[#allocation34_spill] sm:$0xff] %v2269_v27  ;;  %v680_v53 = vrot.slane %v98_v31, %v2102_v18  ;;  %v396_v54 = vrot.slane %v99_v10, %v2093_v14  ;;  %v400_v12 = vrot.slane %v99_v10, %v2096_v15 }
  0x8b   :  { %3399 = vst [vmem:[#allocation35_spill] sm:$0xff] %v2272_v28  ;;  %3400 = vst [vmem:[#allocation36_spill] sm:$0xff] %v2275_v29  ;;  %v964_v55 = vrot.slane %v98_v31, %v2123_v35  ;;  %v168_v13 = vrot.slane %v99_v10, %v2105_v21  ;;  %v172_v57 = vrot.slane %v99_v10, %v2108_v22 }
  0x8c   :  { %3401 = vst [vmem:[#allocation37_spill] sm:$0xff] %v2278_v30  ;;  %3402 = vst [vmem:[#allocation38_spill] sm:$0xff] %v2281_v32  ;;  %v684_v49 = vrot.slane %v99_v10, %v2099_v17  ;;  %v408_v33 = vrot.slane %v100_v46, %v2096_v15  ;;  %v972_v32 = vrot.slane %v99_v10, %v2123_v35 }
  0x8d   :  { %3404 = vst [vmem:[#allocation40_spill] sm:$0xff] %v2287_v34  ;;  %3405 = vst [vmem:[#allocation41_spill] sm:$0xff] %v2290_v45  ;;  %v688_v45 = vrot.slane %v99_v10, %v2102_v18  ;;  %v404_v34 = vrot.slane %v100_v46, %v2093_v14  ;;  %v976_v30 = vrot.slane %v99_v10, %v2126_v36 }
  0x8e   :  { %v176_v29 = vrot.slane %v100_v46, %v2105_v21  ;;  %v180_v31 = vrot.slane %v100_v46, %v2108_v22  ;;  %v2309_v1 = vrot.slane %v676_v52, %v2099_v17  ;;  %v2312_v0 = vrot.slane %v680_v53, %v2099_v17 }
  0x8f   :  { %v2315_v18 = vrot.slane %v396_v54, %v2093_v14  ;;  %v2318_v26 = vrot.slane %v400_v12, %v2093_v14  ;;  %v2321_v15 = vrot.slane %v964_v55, %v2123_v35  ;;  %v2324_v10 = vrot.slane %v968_v56, %v2123_v35 }
  0x90   :  { %3406 = vst [vmem:[#allocation42_spill] sm:$0xff] %v2309_v1  ;;  %3407 = vst [vmem:[#allocation43_spill] sm:$0xff] %v2312_v0  ;;  %v2327_v22 = vrot.slane %v168_v13, %v2105_v21  ;;  %v2330_v46 = vrot.slane %v172_v57, %v2105_v21  ;;  %v2333_v52 = vrot.slane %v684_v49, %v2099_v17 }
  0x91   :  { %3408 = vst [vmem:[#allocation44_spill] sm:$0xff] %v2315_v18  ;;  %3409 = vst [vmem:[#allocation45_spill] sm:$0xff] %v2318_v26  ;;  %v2336_v53 = vrot.slane %v688_v45, %v2099_v17  ;;  %v2339_v12 = vrot.slane %v404_v34, %v2093_v14  ;;  %v2342_v54 = vrot.slane %v408_v33, %v2093_v14 }
  0x92   :  { %3410 = vst [vmem:[#allocation46_spill] sm:$0xff] %v2321_v15  ;;  %3411 = vst [vmem:[#allocation47_spill] sm:$0xff] %v2324_v10  ;;  %v2349_v13 = vrot.slane %v972_v32, %v2123_v35  ;;  %v2352_v57 = vrot.slane %v976_v30, %v2123_v35  ;;  %v2355_v49 = vrot.slane %v176_v29, %v2105_v21 }
  0x93   :  { %3412 = vst [vmem:[#allocation48_spill] sm:$0xff] %v2327_v22  ;;  %3413 = vst [vmem:[#allocation49_spill] sm:$0xff] %v2330_v46  ;;  %v2358_v45 = vrot.slane %v180_v31, %v2105_v21 }
  0x94   :  { %3414 = vst [vmem:[#allocation50_spill] sm:$0xff] %v2333_v52  ;;  %3415 = vst [vmem:[#allocation51_spill] sm:$0xff] %v2336_v53 }
  0x95   :  { %3416 = vst [vmem:[#allocation52_spill] sm:$0xff] %v2339_v12  ;;  %3417 = vst [vmem:[#allocation53_spill] sm:$0xff] %v2342_v54 }
  0x96   :  { %3420 = vst [vmem:[#allocation56_spill] sm:$0xff] %v2349_v13  ;;  %3421 = vst [vmem:[#allocation57_spill] sm:$0xff] %v2352_v57 }
  0x97   :  { %3422 = vst [vmem:[#allocation58_spill] sm:$0xff] %v2355_v49  ;;  %3423 = vst [vmem:[#allocation59_spill] sm:$0xff] %v2358_v45 }
  0xdb   :  { %v2344_v55 = vpop.permute.xlu1 %490  ;;  %v2346_v56 = vpop.permute.xlu0 %778 }
  0xdc   :  { %3418 = vst [vmem:[#allocation54_spill] sm:$0xff] %v2344_v55  ;;  %3419 = vst [vmem:[#allocation55_spill] sm:$0xff] %v2346_v56  ;;  %v2362_v14 = vmul.f32 %v2344_v55, %v2129_v37  ;;  %v2366_v33 = vmul.f32 %v2344_v55, %v2132_v38  ;;  %v2370_v32 = vmul.f32 %v2346_v56, %v2141_v41 }
  0xdd   :  { %v2374_v30 = vmul.f32 %v2346_v56, %v2144_v42  ;;  %v2378_v21 = vmul.f32 %v2344_v55, %v2135_v39  ;;  %v2382_v29 = vmul.f32 %v2344_v55, %v2138_v40  ;;  %v2386_v34 = vmul.f32 %v2346_v56, %v2155_v47 }
  0xde   :  { %v2390_v31 = vmul.f32 %v2346_v56, %v2158_v48  ;;  %v2394_v36 = vmul.f32 %v2344_v55, %v2147_v43  ;;  %v2398_v35 = vmul.f32 %v2344_v55, %v2150_v44  ;;  %v2402_v17 = vmul.f32 %v2346_v56, %v2199_v8 }
  0xdf   :  { %v2406_v54 = vmul.f32 %v2346_v56, %v2202_v9  ;;  %v2408_v12 = vpop.permute.xlu1 %494  ;;  %v2410_v45 = vpop.permute.xlu0 %790  ;;  %v2414_v49 = vmul.f32 %v2344_v55, %v2211_v19  ;;  %v2418_v57 = vmul.f32 %v2344_v55, %v2214_v20  ;;  %v2422_v13 = vmul.f32 %v2346_v56, %v2245_v58 }
  0xe0   :  { %3424 = vst [vmem:[#allocation60_spill] sm:$0xff] %v2402_v17  ;;  %3426 = vst [vmem:[#allocation62_spill] sm:$0xff] %v2408_v12  ;;  %v2426_v53 = vmul.f32 %v2346_v56, %v2248_v59  ;;  %v2430_v52 = vmul.f32 %v2408_v12, %v2129_v37  ;;  %v2434_v26 = vmul.f32 %v2408_v12, %v2132_v38 }
  0xe1   :  { %3425 = vst [vmem:[#allocation61_spill] sm:$0xff] %v2406_v54  ;;  %3427 = vst [vmem:[#allocation63_spill] sm:$0xff] %v2410_v45  ;;  %v2438_v18 = vmul.f32 %v2408_v12, %v2135_v39  ;;  %v2442_v46 = vmul.f32 %v2408_v12, %v2138_v40  ;;  %v2446_v22 = vmul.f32 %v2408_v12, %v2147_v43 }
  0xe2   :  { %3428 = vst [vmem:[#allocation64_spill] sm:$0xff] %v2414_v49  ;;  %3429 = vst [vmem:[#allocation65_spill] sm:$0xff] %v2418_v57  ;;  %v2450_v10 = vmul.f32 %v2408_v12, %v2150_v44  ;;  %v2454_v15 = vmul.f32 %v2410_v45, %v2155_v47  ;;  %v2458_v0 = vmul.f32 %v2410_v45, %v2158_v48 }
  0xe3   :  { %3430 = vst [vmem:[#allocation66_spill] sm:$0xff] %v2422_v13  ;;  %3431 = vst [vmem:[#allocation67_spill] sm:$0xff] %v2426_v53  ;;  %v2462_v1 = vmul.f32 %v2410_v45, %v2141_v41  ;;  %v2466_v59 = vmul.f32 %v2410_v45, %v2144_v42  ;;  %v2470_v58 = vmul.f32 %v2410_v45, %v2199_v8  ;;  %v2476_v13 = vpop.permute.xlu1 %498 }
  0xe4   :  { %3432 = vst [vmem:[#allocation68_spill] sm:$0xff] %v2454_v15  ;;  %3433 = vst [vmem:[#allocation69_spill] sm:$0xff] %v2458_v0  ;;  %v2474_v53 = vmul.f32 %v2410_v45, %v2202_v9  ;;  %v2480_v57 = vmul.f32 %v2408_v12, %v2211_v19  ;;  %v2484_v49 = vmul.f32 %v2408_v12, %v2214_v20  ;;  %v2494_v45 = vpop.permute.xlu0 %1070 }
  0xe5   :  { %3434 = vst [vmem:[#allocation70_spill] sm:$0xff] %v2462_v1  ;;  %3435 = vst [vmem:[#allocation71_spill] sm:$0xff] %v2466_v59  ;;  %v2488_v59 = vmul.f32 %v2344_v55, %v2251_v60  ;;  %v2506_v12 = vmul.f32 %v2476_v13, %v2129_v37  ;;  %v2510_v60 = vmul.f32 %v2476_v13, %v2132_v38 }
  0xe6   :  { %3436 = vst [vmem:[#allocation72_spill] sm:$0xff] %v2470_v58  ;;  %3437 = vst [vmem:[#allocation73_spill] sm:$0xff] %v2474_v53  ;;  %v2492_v58 = vmul.f32 %v2344_v55, %v2254_v61  ;;  %v2498_v53 = vmul.f32 %v2476_v13, %v2135_v39  ;;  %v2514_v55 = vmul.f32 %v2494_v45, %v2181_v2 }
  0xe7   :  { %3438 = vst [vmem:[#allocation74_spill] sm:$0xff] %v2476_v13  ;;  %3439 = vst [vmem:[#allocation75_spill] sm:$0xff] %v2480_v57  ;;  %v2502_v57 = vmul.f32 %v2476_v13, %v2138_v40  ;;  %v2518_v61 = vmul.f32 %v2494_v45, %v2184_v3  ;;  %v2534_v1 = vmul.f32 %v2494_v45, %v2220_v24  ;;  %v2544_v54 = vpop.permute.xlu1 %502 }
  0xe8   :  { %3440 = vst [vmem:[#allocation76_spill] sm:$0xff] %v2484_v49  ;;  %3441 = vst [vmem:[#allocation77_spill] sm:$0xff] %v2488_v59  ;;  %v2526_v59 = vmul.f32 %v2494_v45, %v2196_v7  ;;  %v2530_v49 = vmul.f32 %v2494_v45, %v2217_v23  ;;  %v2538_v0 = vmul.f32 %v2476_v13, %v2147_v43 }
  0xe9   :  { %3442 = vst [vmem:[#allocation78_spill] sm:$0xff] %v2492_v58  ;;  %3443 = vst [vmem:[#allocation79_spill] sm:$0xff] %v2494_v45  ;;  %v2522_v58 = vmul.f32 %v2494_v45, %v2193_v6  ;;  %v2542_v15 = vmul.f32 %v2476_v13, %v2150_v44  ;;  %v2548_v17 = vmul.f32 %v2494_v45, %v2257_v62 }
  0xea   :  { %3444 = vst [vmem:[#allocation80_spill] sm:$0xff] %v2530_v49  ;;  %3445 = vst [vmem:[#allocation81_spill] sm:$0xff] %v2534_v1  ;;  %v2552_v49 = vmul.f32 %v2494_v45, %v2260_v63  ;;  %v2556_v1 = vmul.f32 %v2346_v56, %v2269_v27  ;;  %v2568_v62 = vmul.f32 %v2544_v54, %v2138_v40 }
  0xeb   :  { %3446 = vst [vmem:[#allocation82_spill] sm:$0xff] %v2538_v0  ;;  %3447 = vst [vmem:[#allocation83_spill] sm:$0xff] %v2542_v15  ;;  %v2560_v0 = vmul.f32 %v2346_v56, %v2272_v28  ;;  %v2564_v15 = vmul.f32 %v2544_v54, %v2135_v39  ;;  %v2572_v45 = vmul.f32 %v2544_v54, %v2129_v37 }
  0xec   :  { %3448 = vst [vmem:[#allocation84_spill] sm:$0xff] %v2544_v54  ;;  %3449 = vst [vmem:[#allocation85_spill] sm:$0xff] %v2548_v17  ;;  %v2576_v27 = vmul.f32 %v2544_v54, %v2132_v38  ;;  %v2582_v56 = vmul.f32 %v2544_v54, %v2147_v43  ;;  %v2586_v39 = vmul.f32 %v2544_v54, %v2150_v44 }
  0xed   :  { %3450 = vst [vmem:[#allocation86_spill] sm:$0xff] %v2552_v49  ;;  %3451 = vst [vmem:[#allocation87_spill] sm:$0xff] %v2556_v1  ;;  %v2578_v1 = vpop.permute.xlu0 %263  ;;  %v2590_v40 = vmul.f32 %v2476_v13, %v2211_v19  ;;  %v2594_v37 = vmul.f32 %v2476_v13, %v2214_v20  ;;  %v3460_v19 = vld [vmem:[#allocation25_spill] sm:$0xff] }
  0xee   :  { %3452 = vst [vmem:[#allocation88_spill] sm:$0xff] %v2560_v0  ;;  %3453 = vst [vmem:[#allocation89_spill] sm:$0xff] %v2576_v27  ;;  %v281_v38 = vmul.f32 %v2578_v1, %v2161_v50  ;;  %v282_v28 = vmul.f32 %v2578_v1, %v2164_v51  ;;  %v289_v43 = vmul.f32 %v2578_v1, %v2187_v4 }
  0xef   :  { %3454 = vst [vmem:[#allocation90_spill] sm:$0xff] %v2578_v1  ;;  %3455 = vst [vmem:[#allocation91_spill] sm:$0xff] %v2582_v56  ;;  %v290_v44 = vmul.f32 %v2578_v1, %v2190_v5  ;;  %v2606_v54 = vmul.f32 %v2578_v1, %v2205_v11  ;;  %v2610_v13 = vmul.f32 %v2578_v1, %v2208_v16 }
  0xf0   :  { %3456 = vst [vmem:[#allocation92_spill] sm:$0xff] %v2586_v39  ;;  %3457 = vst [vmem:[#allocation93_spill] sm:$0xff] %v2590_v40  ;;  %v2614_v20 = vmul.f32 %v2578_v1, %v2223_v25  ;;  %v2620_v40 = vpop.permute.xlu1 %782  ;;  %v569_v0 = vadd.f32 %v2362_v14, %v281_v38  ;;  %v570_v49 = vadd.f32 %v2366_v33, %v282_v28 }
  0xf1   :  { %3458 = vst [vmem:[#allocation94_spill] sm:$0xff] %v2594_v37  ;;  %v2618_v37 = vmul.f32 %v2578_v1, %v3460_v19  ;;  %v577_v17 = vadd.f32 %v2378_v21, %v289_v43  ;;  %v578_v39 = vadd.f32 %v2382_v29, %v290_v44  ;;  %v2626_v56 = vpop.permute.xlu0 %268  ;;  %v795_v25 = vmul.f32 %v2620_v40, %v2141_v41 }
  0xf2   :  { %3459 = vst [vmem:[#allocation95_spill] sm:$0xff] %v2614_v20  ;;  %3462 = vst [vmem:[#allocation97_spill] sm:$0xff] %v2626_v56  ;;  %v796_v63 = vmul.f32 %v2620_v40, %v2144_v42  ;;  %v803_v1 = vmul.f32 %v2620_v40, %v2155_v47  ;;  %v804_v14 = vmul.f32 %v2620_v40, %v2158_v48 }
  0xf3   :  { %3461 = vst [vmem:[#allocation96_spill] sm:$0xff] %v2618_v37  ;;  %v857_v28 = vadd.f32 %v2370_v32, %v569_v0  ;;  %v858_v33 = vadd.f32 %v2374_v30, %v570_v49  ;;  %v283_v21 = vmul.f32 %v2626_v56, %v2161_v50  ;;  %v284_v29 = vmul.f32 %v2626_v56, %v2164_v51 }
  0xf4   :  { %v291_v38 = vmul.f32 %v2626_v56, %v2187_v4  ;;  %v292_v43 = vmul.f32 %v2626_v56, %v2190_v5  ;;  %v865_v44 = vadd.f32 %v2386_v34, %v577_v17  ;;  %v866_v19 = vadd.f32 %v2390_v31, %v578_v39  ;;  %v2648_v37 = vpop.permute.xlu1 %786 }
  0xf5   :  { %v571_v0 = vadd.f32 %v2430_v52, %v283_v21  ;;  %v572_v49 = vadd.f32 %v2434_v26, %v284_v29  ;;  %v299_v32 = vmul.f32 %v2626_v56, %v2205_v11  ;;  %v300_v30 = vmul.f32 %v2626_v56, %v2208_v16  ;;  %v2656_v20 = vpop.permute.xlu0 %273 }
  0xf6   :  { %v579_v27 = vadd.f32 %v2438_v18, %v291_v38  ;;  %v580_v17 = vadd.f32 %v2442_v46, %v292_v43  ;;  %v805_v34 = vmul.f32 %v2648_v37, %v2155_v47  ;;  %v806_v52 = vmul.f32 %v2648_v37, %v2158_v48 }
  0xf7   :  { %v859_v31 = vadd.f32 %v795_v25, %v571_v0  ;;  %v860_v26 = vadd.f32 %v796_v63, %v572_v49  ;;  %v293_v39 = vmul.f32 %v2656_v20, %v2187_v4  ;;  %v294_v21 = vmul.f32 %v2656_v20, %v2190_v5 }
  0xf8   :  { %v867_v29 = vadd.f32 %v803_v1, %v579_v27  ;;  %v868_v56 = vadd.f32 %v804_v14, %v580_v17  ;;  %v285_v18 = vmul.f32 %v2656_v20, %v2161_v50  ;;  %v286_v46 = vmul.f32 %v2656_v20, %v2164_v51  ;;  %v2682_v1 = vpop.permute.xlu1 %1066 }
  0xf9   :  { %v2673_v47 = vadd.f32 %v2514_v55, %v859_v31  ;;  %v2676_v48 = vadd.f32 %v2518_v61, %v860_v26  ;;  %v581_v25 = vadd.f32 %v2498_v53, %v293_v39  ;;  %v582_v63 = vadd.f32 %v2502_v57, %v294_v21  ;;  %v2680_v38 = vpop.permute.xlu0 %278 }
  0xfa   :  { %v2685_v27 = vadd.f32 %v2522_v58, %v867_v29  ;;  %v2688_v14 = vadd.f32 %v2526_v59, %v868_v56  ;;  %v573_v55 = vadd.f32 %v2506_v12, %v285_v18  ;;  %v574_v43 = vadd.f32 %v2510_v60, %v286_v46 }
  0xfb   :  { %v1081_v61 = vmul.f32 %v2682_v1, %v2181_v2  ;;  %v1082_v53 = vmul.f32 %v2682_v1, %v2184_v3  ;;  %v1089_v57 = vmul.f32 %v2682_v1, %v2193_v6  ;;  %v1090_v58 = vmul.f32 %v2682_v1, %v2196_v7 }
  0xfc   :  { %v869_v0 = vadd.f32 %v805_v34, %v581_v25  ;;  %v870_v49 = vadd.f32 %v806_v52, %v582_v63  ;;  %v797_v59 = vmul.f32 %v2648_v37, %v2141_v41  ;;  %v798_v60 = vmul.f32 %v2648_v37, %v2144_v42  ;;  %v2706_v39 = vpop.permute.xlu1 %1074 }
  0xfd   :  { %v1145_v12 = vadd.f32 %v1081_v61, %v857_v28  ;;  %v1146_v56 = vadd.f32 %v1082_v53, %v858_v33  ;;  %v1153_v17 = vadd.f32 %v1089_v57, %v865_v44  ;;  %v1154_v31 = vadd.f32 %v1090_v58, %v866_v19  ;;  %v2704_v26 = vpop.permute.xlu0 %1211 }
  0xfe   :  { %v861_v21 = vadd.f32 %v797_v59, %v573_v55  ;;  %v862_v29 = vadd.f32 %v798_v60, %v574_v43  ;;  %v587_v18 = vadd.f32 %v2446_v22, %v299_v32  ;;  %v588_v34 = vadd.f32 %v2450_v10, %v300_v30 }
  0xff   :  { %v1229_v52 = vadd.f32 %v2704_v26, %v1145_v12  ;;  %v1230_v41 = vadd.f32 %v2704_v26, %v1146_v56  ;;  %v1237_v42 = vadd.f32 %v2704_v26, %v1153_v17  ;;  %v1238_v28 = vadd.f32 %v2704_v26, %v1154_v31 }
 0x100   :  { %v1093_v19 = vmul.f32 %v2706_v39, %v2193_v6  ;;  %v1094_v33 = vmul.f32 %v2706_v39, %v2196_v7  ;;  %v1085_v44 = vmul.f32 %v2706_v39, %v2181_v2  ;;  %v1086_v10 = vmul.f32 %v2706_v39, %v2184_v3  ;;  %v2722_v25 = vpop.permute.xlu1 %1078 }
 0x101   :  { %v1293_v22 = vmax.f32 %v1229_v52, 0.0  ;;  %v1294_v32 = vmax.f32 %v1230_v41, 0.0  ;;  %v1301_v30 = vmax.f32 %v1237_v42, 0.0  ;;  %v1302_v46 = vmax.f32 %v1238_v28, 0.0  ;;  %v3466_v42 = vld [vmem:[#allocation81_spill] sm:$0xff] }
 0x102   :  { %v1157_v63 = vadd.f32 %v1093_v19, %v869_v0  ;;  %v1158_v55 = vadd.f32 %v1094_v33, %v870_v49  ;;  %v1149_v43 = vadd.f32 %v1085_v44, %v861_v21  ;;  %v1150_v61 = vadd.f32 %v1086_v10, %v862_v29  ;;  %v3463_v29 = vld [vmem:[#allocation60_spill] sm:$0xff] }
 0x103   :  { %v1358_v53 = vadd.f32 %v1294_v32, %v1293_v22  ;;  %v2724_v57 = vadd.f32 %v1302_v46, %v1301_v30  ;;  %v811_v58 = vmul.f32 %v2620_v40, %v2199_v8  ;;  %v812_v59 = vmul.f32 %v2620_v40, %v2202_v9 }
 0x104   :  { %v585_v60 = vadd.f32 %v2394_v36, %v2606_v54  ;;  %v586_v12 = vadd.f32 %v2398_v35, %v2610_v13  ;;  %v1097_v0 = vmul.f32 %v2682_v1, %v2217_v23  ;;  %v1098_v49 = vmul.f32 %v2682_v1, %v2220_v24  ;;  %v3464_v54 = vld [vmem:[#allocation61_spill] sm:$0xff]  ;;  %v2748_v41 = vpop.permute.xlu1 %1216 }
 0x105   :  { %1359 = vadd.xlane.f32.xlu1 %v1358_v53  ;;  %v875_v56 = vadd.f32 %v811_v58, %v587_v18  ;;  %v876_v17 = vadd.f32 %v812_v59, %v588_v34  ;;  %v295_v31 = vmul.f32 %v2680_v38, %v2187_v4  ;;  %v296_v21 = vmul.f32 %v2680_v38, %v2190_v5  ;;  %v3465_v18 = vld [vmem:[#allocation80_spill] sm:$0xff] }
 0x106   :  { %v873_v36 = vadd.f32 %v3463_v29, %v585_v60  ;;  %v874_v52 = vadd.f32 %v3464_v54, %v586_v12  ;;  %v1095_v35 = vmul.f32 %v2722_v25, %v2193_v6  ;;  %v1096_v13 = vmul.f32 %v2722_v25, %v2196_v7 }
 0x107   :  { %v1163_v34 = vadd.f32 %v3465_v18, %v875_v56  ;;  %v1164_v28 = vadd.f32 %v3466_v42, %v876_v17  ;;  %v583_v4 = vadd.f32 %v2564_v15, %v295_v31  ;;  %v584_v5 = vadd.f32 %v2568_v62, %v296_v21 }
 0x108   :  { %v1231_v19 = vadd.f32 %v2748_v41, %v2673_v47  ;;  %v1232_v33 = vadd.f32 %v2748_v41, %v2676_v48  ;;  %v1239_v6 = vadd.f32 %v2748_v41, %v2685_v27  ;;  %v1240_v7 = vadd.f32 %v2748_v41, %v2688_v14  ;;  %v2764_v47 = vpop.permute.xlu1 %1221 }
 0x109   :  { %v1247_v44 = vadd.f32 %v2748_v41, %v1163_v34  ;;  %v1248_v10 = vadd.f32 %v2748_v41, %v1164_v28  ;;  %v1161_v22 = vadd.f32 %v1097_v0, %v873_v36  ;;  %v1162_v15 = vadd.f32 %v1098_v49, %v874_v52  ;;  %v3467_v36 = vld [vmem:[#allocation68_spill] sm:$0xff]  ;;  %v3468_v34 = vld [vmem:[#allocation69_spill] sm:$0xff] }
 0x10a   :  { %v1295_v32 = vmax.f32 %v1231_v19, 0.0  ;;  %v1296_v62 = vmax.f32 %v1232_v33, 0.0  ;;  %v1303_v30 = vmax.f32 %v1239_v6, 0.0  ;;  %v1304_v46 = vmax.f32 %v1240_v7, 0.0  ;;  %v2778_v19 = vpop.permute.xlu0 %1226 }
 0x10b   :  { %v1311_v53 = vmax.f32 %v1247_v44, 0.0  ;;  %v1312_v48 = vmax.f32 %v1248_v10, 0.0  ;;  %v1245_v58 = vadd.f32 %v2704_v26, %v1161_v22  ;;  %v1246_v27 = vadd.f32 %v2704_v26, %v1162_v15  ;;  %v3470_v10 = vld [vmem:[#allocation70_spill] sm:$0xff]  ;;  %v3472_v15 = vld [vmem:[#allocation64_spill] sm:$0xff] }
 0x10c   :  { %v1361_v59 = vadd.f32 %v1296_v62, %v1295_v32  ;;  %v1373_v14 = vadd.f32 %v1304_v46, %v1303_v30  ;;  %v1241_v60 = vadd.f32 %v2764_v47, %v1157_v63  ;;  %v1242_v12 = vadd.f32 %v2764_v47, %v1158_v55  ;;  %v3473_v32 = vld [vmem:[#allocation96_spill] sm:$0xff]  ;;  %v3474_v62 = vld [vmem:[#allocation65_spill] sm:$0xff] }
 0x10d   :  { %v1233_v0 = vadd.f32 %v2764_v47, %v1149_v43  ;;  %v1234_v49 = vadd.f32 %v2764_v47, %v1150_v61  ;;  %v1385_v56 = vadd.f32 %v1312_v48, %v1311_v53  ;;  %v1309_v17 = vmax.f32 %v1245_v58, 0.0  ;;  %v3476_v53 = vld [vmem:[#allocation30_spill] sm:$0xff]  ;;  %v3477_v58 = vld [vmem:[#allocation31_spill] sm:$0xff] }
 0x10e   :  { %1362 = vadd.xlane.f32.xlu0 %v1361_v59  ;;  %1374 = vadd.xlane.f32.xlu1 %v1373_v14  ;;  %v1305_v31 = vmax.f32 %v1241_v60, 0.0  ;;  %v1306_v21 = vmax.f32 %v1242_v12, 0.0  ;;  %v1310_v29 = vmax.f32 %v1246_v27, 0.0  ;;  %v871_v54 = vadd.f32 %v3467_v36, %v583_v4  ;;  %v3478_v14 = vld [vmem:[#allocation66_spill] sm:$0xff]  ;;  %v3479_v12 = vld [vmem:[#allocation67_spill] sm:$0xff] }
 0x10f   :  { %v1297_v52 = vmax.f32 %v1233_v0, 0.0  ;;  %v1298_v18 = vmax.f32 %v1234_v49, 0.0  ;;  %v872_v42 = vadd.f32 %v3468_v34, %v584_v5  ;;  %v287_v63 = vmul.f32 %v2680_v38, %v2161_v50  ;;  %v3469_v5 = vld [vmem:[#allocation89_spill] sm:$0xff] }
 0x110   :  { %v1376_v55 = vadd.f32 %v1306_v21, %v1305_v31  ;;  %v1382_v43 = vadd.f32 %v1310_v29, %v1309_v17  ;;  %v1159_v28 = vadd.f32 %v1095_v35, %v871_v54  ;;  %v288_v61 = vmul.f32 %v2680_v38, %v2164_v51 }
 0x111   :  { %v1364_v33 = vadd.f32 %v1298_v18, %v1297_v52  ;;  %v1160_v6 = vadd.f32 %v1096_v13, %v872_v42  ;;  %v575_v7 = vadd.f32 %v2572_v45, %v287_v63  ;;  %v1087_v4 = vmul.f32 %v2722_v25, %v2181_v2  ;;  %v3471_v13 = vld [vmem:[#allocation95_spill] sm:$0xff]  ;;  %v3480_v18 = vld [vmem:[#allocation82_spill] sm:$0xff] }
 0x112   :  { %1371 = vadd.xlane.f32.xlu0 %v2724_v57  ;;  %1377 = vadd.xlane.f32.xlu1 %v1376_v55  ;;  %v1243_v50 = vadd.f32 %v2778_v19, %v1159_v28  ;;  %v576_v44 = vadd.f32 %v3469_v5, %v288_v61  ;;  %v1088_v35 = vmul.f32 %v2722_v25, %v2184_v3  ;;  %v3475_v57 = vld [vmem:[#allocation71_spill] sm:$0xff] }
 0x113   :  { %v1244_v51 = vadd.f32 %v2778_v19, %v1160_v6  ;;  %v863_v22 = vadd.f32 %v3470_v10, %v575_v7  ;;  %v593_v45 = vadd.f32 %v3472_v15, %v3471_v13  ;;  %v594_v2 = vadd.f32 %v3474_v62, %v3473_v32  ;;  %v3481_v42 = vld [vmem:[#allocation83_spill] sm:$0xff] }
 0x114   :  { %v1307_v30 = vmax.f32 %v1243_v50, 0.0  ;;  %v864_v46 = vadd.f32 %v3475_v57, %v576_v44  ;;  %v1105_v48 = vmul.f32 %v2682_v1, %v3476_v53  ;;  %v1106_v27 = vmul.f32 %v2682_v1, %v3477_v58  ;;  %v3482_v15 = vld [vmem:[#allocation91_spill] sm:$0xff]  ;;  %v3485_v57 = vld [vmem:[#allocation97_spill] sm:$0xff] }
 0x115   :  { %v1308_v3 = vmax.f32 %v1244_v51, 0.0  ;;  %v1151_v59 = vadd.f32 %v1087_v4, %v863_v22  ;;  %v881_v60 = vadd.f32 %v3478_v14, %v593_v45  ;;  %v882_v0 = vadd.f32 %v3479_v12, %v594_v2  ;;  %v3483_v2 = vld [vmem:[#allocation92_spill] sm:$0xff] }
 0x116   :  { %1365 = vadd.xlane.f32.xlu0 %v1364_v33  ;;  %1386 = vadd.xlane.f32.xlu1 %v1385_v56  ;;  %v1152_v49 = vadd.f32 %v1088_v35, %v864_v46  ;;  %v301_v17 = vmul.f32 %v2656_v20, %v2205_v11  ;;  %v302_v31 = vmul.f32 %v2656_v20, %v2208_v16 }
 0x117   :  { %v1379_v21 = vadd.f32 %v1308_v3, %v1307_v30  ;;  %v1235_v29 = vadd.f32 %v2778_v19, %v1151_v59  ;;  %v1169_v36 = vadd.f32 %v1105_v48, %v881_v60  ;;  %v1170_v54 = vadd.f32 %v1106_v27, %v882_v0  ;;  %v3484_v30 = vld [vmem:[#allocation24_spill] sm:$0xff]  ;;  %v3486_v48 = vld [vmem:[#allocation25_spill] sm:$0xff]  ;;  %v3488_v59 = vld [vmem:[#allocation26_spill] sm:$0xff] }
 0x118   :  { %v1236_v52 = vadd.f32 %v2778_v19, %v1152_v49  ;;  %v589_v34 = vadd.f32 %v3480_v18, %v301_v17  ;;  %v590_v63 = vadd.f32 %v3481_v42, %v302_v31  ;;  %v813_v56 = vmul.f32 %v2648_v37, %v2199_v8  ;;  %v3487_v27 = vld [vmem:[#allocation72_spill] sm:$0xff]  ;;  %v3490_v0 = vld [vmem:[#allocation73_spill] sm:$0xff]  ;;  %v3491_v17 = vld [vmem:[#allocation75_spill] sm:$0xff] }
 0x119   :  { %v1299_v55 = vmax.f32 %v1235_v29, 0.0  ;;  %v1253_v28 = vadd.f32 %v2704_v26, %v1169_v36  ;;  %v1254_v61 = vadd.f32 %v2704_v26, %v1170_v54  ;;  %v814_v33 = vmul.f32 %v2648_v37, %v2202_v9  ;;  %v3494_v18 = vld [vmem:[#allocation90_spill] sm:$0xff]  ;;  %v3495_v42 = vld [vmem:[#allocation33_spill] sm:$0xff] }
 0x11a   :  { %1383 = vadd.xlane.f32.xlu0 %v1382_v43  ;;  %1380 = vadd.xlane.f32.xlu1 %v1379_v21  ;;  %v1300_v6 = vmax.f32 %v1236_v52, 0.0  ;;  %v877_v7 = vadd.f32 %v813_v56, %v589_v34  ;;  %v1101_v4 = vmul.f32 %v2706_v39, %v2217_v23  ;;  %v1102_v50 = vmul.f32 %v2706_v39, %v2220_v24  ;;  %v3492_v21 = vld [vmem:[#allocation76_spill] sm:$0xff] }
 0x11b   :  { %v1317_v5 = vmax.f32 %v1253_v28, 0.0  ;;  %v1318_v8 = vmax.f32 %v1254_v61, 0.0  ;;  %v878_v44 = vadd.f32 %v814_v33, %v590_v63  ;;  %v303_v35 = vmul.f32 %v2680_v38, %v2205_v11  ;;  %v3493_v52 = vld [vmem:[#allocation32_spill] sm:$0xff] }
 0x11c   :  { %v1367_v51 = vadd.f32 %v1300_v6, %v1299_v55  ;;  %v1165_v10 = vadd.f32 %v1101_v4, %v877_v7  ;;  %v304_v9 = vmul.f32 %v2680_v38, %v2208_v16  ;;  %v1103_v43 = vmul.f32 %v2722_v25, %v2217_v23  ;;  %v3496_v61 = vld [vmem:[#allocation36_spill] sm:$0xff]  ;;  %v3497_v4 = vld [vmem:[#allocation77_spill] sm:$0xff] }
 0x11d   :  { %v1394_v22 = vadd.f32 %v1318_v8, %v1317_v5  ;;  %v1166_v13 = vadd.f32 %v1102_v50, %v878_v44  ;;  %v591_v45 = vadd.f32 %v3482_v15, %v303_v35  ;;  %v1104_v32 = vmul.f32 %v2722_v25, %v2220_v24  ;;  %v3489_v24 = vld [vmem:[#allocation27_spill] sm:$0xff]  ;;  %v3498_v5 = vld [vmem:[#allocation78_spill] sm:$0xff]  ;;  %v3499_v35 = vld [vmem:[#allocation85_spill] sm:$0xff] }
 0x11e   :  { %1368 = vadd.xlane.f32.xlu0 %v1367_v51  ;;  %v1249_v62 = vadd.f32 %v2764_v47, %v1165_v10  ;;  %v592_v11 = vadd.f32 %v3483_v2, %v304_v9  ;;  %v307_v46 = vmul.f32 %v3485_v57, %v3484_v30  ;;  %v308_v16 = vmul.f32 %v3485_v57, %v3486_v48  ;;  %v3500_v10 = vld [vmem:[#allocation86_spill] sm:$0xff]  ;;  %v3502_v15 = vld [vmem:[#allocation87_spill] sm:$0xff] }
 0x11f   :  { %1395 = vadd.xlane.f32.xlu1 %v1394_v22  ;;  %v1250_v23 = vadd.f32 %v2764_v47, %v1166_v13  ;;  %v879_v3 = vadd.f32 %v3487_v27, %v591_v45  ;;  %v819_v14 = vmul.f32 %v2620_v40, %v3488_v59  ;;  %v820_v60 = vmul.f32 %v2620_v40, %v3489_v24 }
 0x120   :  { %v1313_v12 = vmax.f32 %v1249_v62, 0.0  ;;  %v880_v49 = vadd.f32 %v3490_v0, %v592_v11  ;;  %v595_v31 = vadd.f32 %v3491_v17, %v307_v46  ;;  %v596_v29 = vadd.f32 %v3492_v21, %v308_v16 }
 0x121   :  { %v1314_v36 = vmax.f32 %v1250_v23, 0.0  ;;  %v1167_v54 = vadd.f32 %v1103_v43, %v879_v3  ;;  %v313_v34 = vmul.f32 %v3494_v18, %v3493_v52  ;;  %v314_v63 = vmul.f32 %v3494_v18, %v3495_v42  ;;  %v3501_v43 = vld [vmem:[#allocation37_spill] sm:$0xff] }
 0x122   :  { %v1168_v56 = vadd.f32 %v1104_v32, %v880_v49  ;;  %v883_v55 = vadd.f32 %v819_v14, %v595_v31  ;;  %v884_v28 = vadd.f32 %v820_v60, %v596_v29  ;;  %v1113_v33 = vmul.f32 %v2682_v1, %v3496_v61  ;;  %v3503_v32 = vld [vmem:[#allocation88_spill] sm:$0xff]  ;;  %v3504_v14 = vld [vmem:[#allocation93_spill] sm:$0xff]  ;;  %v3505_v31 = vld [vmem:[#allocation94_spill] sm:$0xff] }
 0x123   :  { %v1388_v6 = vadd.f32 %v1314_v36, %v1313_v12  ;;  %v1251_v7 = vadd.f32 %v2778_v19, %v1167_v54  ;;  %v601_v50 = vadd.f32 %v3497_v4, %v313_v34  ;;  %v602_v8 = vadd.f32 %v3498_v5, %v314_v63  ;;  %v3506_v5 = vld [vmem:[#allocation22_spill] sm:$0xff] }
 0x124   :  { %v1252_v44 = vadd.f32 %v2778_v19, %v1168_v56  ;;  %v1171_v51 = vadd.f32 %v3499_v35, %v883_v55  ;;  %v1172_v9 = vadd.f32 %v3500_v10, %v884_v28  ;;  %v1114_v22 = vmul.f32 %v2682_v1, %v3501_v43  ;;  %v3508_v35 = vld [vmem:[#allocation23_spill] sm:$0xff] }
 0x125   :  { %1389 = vadd.xlane.f32.xlu0 %v1388_v6  ;;  %v1315_v13 = vmax.f32 %v1251_v7, 0.0  ;;  %v889_v45 = vadd.f32 %v3502_v15, %v601_v50  ;;  %v890_v62 = vadd.f32 %v3503_v32, %v602_v8  ;;  %v309_v2 = vmul.f32 %v2656_v20, %v3484_v30  ;;  %v3507_v8 = vld [vmem:[#allocation84_spill] sm:$0xff]  ;;  %v3509_v10 = vld [vmem:[#allocation63_spill] sm:$0xff] }
 0x126   :  { %v1316_v11 = vmax.f32 %v1252_v44, 0.0  ;;  %v1255_v46 = vadd.f32 %v2748_v41, %v1171_v51  ;;  %v1256_v16 = vadd.f32 %v2748_v41, %v1172_v9  ;;  %v310_v23 = vmul.f32 %v2656_v20, %v3486_v48 }
 0x127   :  { %v1177_v27 = vadd.f32 %v1113_v33, %v889_v45  ;;  %v1178_v3 = vadd.f32 %v1114_v22, %v890_v62  ;;  %v597_v60 = vadd.f32 %v3504_v14, %v309_v2  ;;  %v821_v12 = vmul.f32 %v2648_v37, %v3488_v59 }
 0x128   :  { %v1391_v0 = vadd.f32 %v1316_v11, %v1315_v13  ;;  %v1319_v49 = vmax.f32 %v1255_v46, 0.0  ;;  %v1320_v17 = vmax.f32 %v1256_v16, 0.0  ;;  %v598_v21 = vadd.f32 %v3505_v31, %v310_v23  ;;  %v3511_v46 = vld [vmem:[#allocation62_spill] sm:$0xff] }
 0x129   :  { %v1261_v29 = vadd.f32 %v2704_v26, %v1177_v27  ;;  %v1262_v36 = vadd.f32 %v2704_v26, %v1178_v3  ;;  %v822_v54 = vmul.f32 %v2648_v37, %v3489_v24  ;;  %v885_v34 = vadd.f32 %v821_v12, %v597_v60  ;;  %v3512_v3 = vld [vmem:[#allocation29_spill] sm:$0xff]  ;;  %v3513_v12 = vld [vmem:[#allocation34_spill] sm:$0xff] }
 0x12a   :  { %1392 = vadd.xlane.f32.xlu1 %v1391_v0  ;;  %v1397_v63 = vadd.f32 %v1320_v17, %v1319_v49  ;;  %v1109_v56 = vmul.f32 %v2706_v39, %v3476_v53  ;;  %v1110_v55 = vmul.f32 %v2706_v39, %v3477_v58  ;;  %v311_v28 = vmul.f32 %v2680_v38, %v3484_v30  ;;  %v3514_v49 = vld [vmem:[#allocation35_spill] sm:$0xff] }
 0x12b   :  { %v1325_v33 = vmax.f32 %v1261_v29, 0.0  ;;  %v1326_v6 = vmax.f32 %v1262_v36, 0.0  ;;  %v886_v7 = vadd.f32 %v822_v54, %v598_v21  ;;  %v312_v4 = vmul.f32 %v2680_v38, %v3486_v48  ;;  %v3515_v36 = vld [vmem:[#allocation79_spill] sm:$0xff] }
 0x12c   :  { %1398 = vadd.xlane.f32.xlu0 %v1397_v63  ;;  %v1173_v50 = vadd.f32 %v1109_v56, %v885_v34  ;;  %v535_v44 = vmul.f32 %v3507_v8, %v3506_v5  ;;  %v536_v51 = vmul.f32 %v3507_v8, %v3508_v35  ;;  %v823_v9 = vmul.f32 %v3509_v10, %v3488_v59  ;;  %v3519_v35 = vld [vmem:[#allocation54_spill] sm:$0xff] }
 0x12d   :  { %v1406_v22 = vadd.f32 %v1326_v6, %v1325_v33  ;;  %v1174_v13 = vadd.f32 %v1110_v55, %v886_v7  ;;  %v824_v30 = vmul.f32 %v3509_v10, %v3489_v24  ;;  %v1111_v15 = vmul.f32 %v2722_v25, %v3476_v53  ;;  %v3510_v24 = vld [vmem:[#allocation28_spill] sm:$0xff]  ;;  %v3516_v55 = vld [vmem:[#allocation38_spill] sm:$0xff] }
 0x12e   :  { %v1257_v48 = vadd.f32 %v2764_v47, %v1173_v50  ;;  %v599_v45 = vadd.f32 %v535_v44, %v311_v28  ;;  %v600_v32 = vadd.f32 %v536_v51, %v312_v4  ;;  %v1112_v62 = vmul.f32 %v2722_v25, %v3477_v58  ;;  %v3517_v4 = vld [vmem:[#allocation39_spill] sm:$0xff]  ;;  %v3518_v44 = vld [vmem:[#allocation40_spill] sm:$0xff] }
 0x12f   :  { %1407 = vadd.xlane.f32.xlu1 %v1406_v22  ;;  %v1258_v2 = vadd.f32 %v2764_v47, %v1174_v13  ;;  %v315_v59 = vmul.f32 %v3485_v57, %v3493_v52  ;;  %v316_v11 = vmul.f32 %v3485_v57, %v3495_v42  ;;  %v539_v16 = vmul.f32 %v3511_v46, %v3510_v24  ;;  %v3521_v13 = vld [vmem:[#allocation42_spill] sm:$0xff] }
 0x130   :  { %v1321_v53 = vmax.f32 %v1257_v48, 0.0  ;;  %v887_v23 = vadd.f32 %v823_v9, %v599_v45  ;;  %v888_v27 = vadd.f32 %v824_v30, %v600_v32  ;;  %v540_v14 = vmul.f32 %v3511_v46, %v3512_v3  ;;  %v3520_v9 = vld [vmem:[#allocation41_spill] sm:$0xff]  ;;  %v3522_v30 = vld [vmem:[#allocation55_spill] sm:$0xff] }
 0x131   :  { %v1322_v60 = vmax.f32 %v1258_v2, 0.0  ;;  %v603_v58 = vadd.f32 %v539_v16, %v315_v59  ;;  %v827_v0 = vmul.f32 %v2620_v40, %v3513_v12  ;;  %v828_v17 = vmul.f32 %v2620_v40, %v3514_v49 }
 0x132   :  { %v1175_v31 = vadd.f32 %v1111_v15, %v887_v23  ;;  %v1176_v21 = vadd.f32 %v1112_v62, %v888_v27  ;;  %v604_v29 = vadd.f32 %v540_v14, %v316_v11  ;;  %v1115_v54 = vmul.f32 %v3515_v36, %v3496_v61  ;;  %v3523_v62 = vld [vmem:[#allocation43_spill] sm:$0xff] }
 0x133   :  { %v1400_v34 = vadd.f32 %v1322_v60, %v1321_v53  ;;  %v891_v63 = vadd.f32 %v827_v0, %v603_v58  ;;  %v1116_v56 = vmul.f32 %v3515_v36, %v3501_v43  ;;  %v321_v28 = vmul.f32 %v3494_v18, %v3516_v55  ;;  %v3524_v53 = vld [vmem:[#allocation46_spill] sm:$0xff]  ;;  %v3525_v60 = vld [vmem:[#allocation47_spill] sm:$0xff] }
 0x134   :  { %v1259_v33 = vadd.f32 %v2778_v19, %v1175_v31  ;;  %v1260_v6 = vadd.f32 %v2778_v19, %v1176_v21  ;;  %v892_v7 = vadd.f32 %v828_v17, %v604_v29  ;;  %v322_v50 = vmul.f32 %v3494_v18, %v3517_v4 }
 0x135   :  { %1401 = vadd.xlane.f32.xlu0 %v1400_v34  ;;  %v1179_v5 = vadd.f32 %v1115_v54, %v891_v63  ;;  %v545_v51 = vmul.f32 %v3519_v35, %v3518_v44  ;;  %v546_v22 = vmul.f32 %v3519_v35, %v3520_v9  ;;  %v833_v15 = vmul.f32 %v3522_v30, %v3521_v13  ;;  %v3526_v34 = vld [vmem:[#allocation74_spill] sm:$0xff] }
 0x136   :  { %v1323_v48 = vmax.f32 %v1259_v33, 0.0  ;;  %v1324_v45 = vmax.f32 %v1260_v6, 0.0  ;;  %v1180_v32 = vadd.f32 %v1116_v56, %v892_v7  ;;  %v834_v2 = vmul.f32 %v3522_v30, %v3523_v62 }
 0x137   :  { %v1263_v59 = vadd.f32 %v2748_v41, %v1179_v5  ;;  %v609_v11 = vadd.f32 %v545_v51, %v321_v28  ;;  %v610_v16 = vadd.f32 %v546_v22, %v322_v50  ;;  %v1121_v23 = vmul.f32 %v2682_v1, %v3524_v53 }
 0x138   :  { %v1403_v27 = vadd.f32 %v1324_v45, %v1323_v48  ;;  %v1264_v14 = vadd.f32 %v2748_v41, %v1180_v32  ;;  %v1122_v58 = vmul.f32 %v2682_v1, %v3525_v60  ;;  %v317_v0 = vmul.f32 %v2656_v20, %v3493_v52 }
 0x139   :  { %v1327_v17 = vmax.f32 %v1263_v59, 0.0  ;;  %v897_v31 = vadd.f32 %v833_v15, %v609_v11  ;;  %v898_v21 = vadd.f32 %v834_v2, %v610_v16  ;;  %v318_v29 = vmul.f32 %v2656_v20, %v3495_v42 }
 0x13a   :  { %1404 = vadd.xlane.f32.xlu1 %v1403_v27  ;;  %v1328_v54 = vmax.f32 %v1264_v14, 0.0  ;;  %v541_v63 = vmul.f32 %v3526_v34, %v3510_v24  ;;  %v542_v56 = vmul.f32 %v3526_v34, %v3512_v3  ;;  %v829_v28 = vmul.f32 %v2648_v37, %v3513_v12 }
 0x13b   :  { %v1185_v33 = vadd.f32 %v1121_v23, %v897_v31  ;;  %v1186_v6 = vadd.f32 %v1122_v58, %v898_v21  ;;  %v830_v7 = vmul.f32 %v2648_v37, %v3514_v49  ;;  %v1117_v50 = vmul.f32 %v2706_v39, %v3496_v61 }
 0x13c   :  { %v1409_v5 = vadd.f32 %v1328_v54, %v1327_v17  ;;  %v605_v51 = vadd.f32 %v541_v63, %v317_v0  ;;  %v606_v22 = vadd.f32 %v542_v56, %v318_v29  ;;  %v1118_v15 = vmul.f32 %v2706_v39, %v3501_v43 }
 0x13d   :  { %v1269_v48 = vadd.f32 %v2704_v26, %v1185_v33  ;;  %v1270_v45 = vadd.f32 %v2704_v26, %v1186_v6  ;;  %v319_v32 = vmul.f32 %v2680_v38, %v3493_v52  ;;  %v320_v2 = vmul.f32 %v2680_v38, %v3495_v42 }
 0x13e   :  { %1410 = vadd.xlane.f32.xlu0 %v1409_v5  ;;  %v893_v59 = vadd.f32 %v829_v28, %v605_v51  ;;  %v894_v11 = vadd.f32 %v830_v7, %v606_v22  ;;  %v543_v16 = vmul.f32 %v3507_v8, %v3510_v24  ;;  %v544_v23 = vmul.f32 %v3507_v8, %v3512_v3 }
 0x13f   :  { %v1333_v27 = vmax.f32 %v1269_v48, 0.0  ;;  %v1334_v14 = vmax.f32 %v1270_v45, 0.0  ;;  %v831_v58 = vmul.f32 %v3509_v10, %v3513_v12  ;;  %v832_v52 = vmul.f32 %v3509_v10, %v3514_v49 }
 0x140   :  { %v1181_v0 = vadd.f32 %v1117_v50, %v893_v59  ;;  %v1182_v17 = vadd.f32 %v1118_v15, %v894_v11  ;;  %v607_v42 = vadd.f32 %v543_v16, %v319_v32  ;;  %v608_v31 = vadd.f32 %v544_v23, %v320_v2  ;;  %v3527_v16 = vld [vmem:[#allocation48_spill] sm:$0xff] }
 0x141   :  { %v1418_v21 = vadd.f32 %v1334_v14, %v1333_v27  ;;  %v1119_v29 = vmul.f32 %v2722_v25, %v3496_v61  ;;  %v1120_v24 = vmul.f32 %v2722_v25, %v3501_v43  ;;  %v323_v3 = vmul.f32 %v3485_v57, %v3516_v55  ;;  %v3528_v27 = vld [vmem:[#allocation49_spill] sm:$0xff] }
 0x142   :  { %v1265_v54 = vadd.f32 %v2764_v47, %v1181_v0  ;;  %v1266_v12 = vadd.f32 %v2764_v47, %v1182_v17  ;;  %v895_v63 = vadd.f32 %v831_v58, %v607_v42  ;;  %v896_v49 = vadd.f32 %v832_v52, %v608_v31  ;;  %v3529_v0 = vld [vmem:[#allocation44_spill] sm:$0xff]  ;;  %v3530_v42 = vld [vmem:[#allocation45_spill] sm:$0xff] }
 0x143   :  { %1419 = vadd.xlane.f32.xlu1 %v1418_v21  ;;  %v324_v56 = vmul.f32 %v3485_v57, %v3517_v4  ;;  %v547_v28 = vmul.f32 %v3511_v46, %v3518_v44  ;;  %v548_v61 = vmul.f32 %v3511_v46, %v3520_v9  ;;  %v835_v43 = vmul.f32 %v2620_v40, %v3521_v13 }
 0x144   :  { %v1329_v33 = vmax.f32 %v1265_v54, 0.0  ;;  %v1330_v6 = vmax.f32 %v1266_v12, 0.0  ;;  %v1183_v7 = vadd.f32 %v1119_v29, %v895_v63  ;;  %v1184_v50 = vadd.f32 %v1120_v24, %v896_v49  ;;  %v3531_v24 = vld [vmem:[#allocation50_spill] sm:$0xff]  ;;  %v3532_v54 = vld [vmem:[#allocation51_spill] sm:$0xff] }
 0x145   :  { %v611_v5 = vadd.f32 %v547_v28, %v323_v3  ;;  %v612_v51 = vadd.f32 %v548_v61, %v324_v56  ;;  %v836_v22 = vmul.f32 %v2620_v40, %v3523_v62  ;;  %v1123_v15 = vmul.f32 %v3515_v36, %v3524_v53  ;;  %v3533_v28 = vld [vmem:[#allocation56_spill] sm:$0xff] }
 0x146   :  { %v1412_v48 = vadd.f32 %v1330_v6, %v1329_v33  ;;  %v1267_v45 = vadd.f32 %v2778_v19, %v1183_v7  ;;  %v1268_v32 = vadd.f32 %v2778_v19, %v1184_v50  ;;  %v1124_v2 = vmul.f32 %v3515_v36, %v3525_v60  ;;  %v3534_v6 = vld [vmem:[#allocation57_spill] sm:$0xff] }
 0x147   :  { %v899_v59 = vadd.f32 %v835_v43, %v611_v5  ;;  %v900_v11 = vadd.f32 %v836_v22, %v612_v51  ;;  %v329_v23 = vmul.f32 %v3494_v18, %v3527_v16  ;;  %v330_v14 = vmul.f32 %v3494_v18, %v3528_v27 }
 0x148   :  { %1413 = vadd.xlane.f32.xlu0 %v1412_v48  ;;  %v1331_v58 = vmax.f32 %v1267_v45, 0.0  ;;  %v1332_v52 = vmax.f32 %v1268_v32, 0.0  ;;  %v553_v17 = vmul.f32 %v3519_v35, %v3529_v0  ;;  %v554_v31 = vmul.f32 %v3519_v35, %v3530_v42 }
 0x149   :  { %v1187_v21 = vadd.f32 %v1123_v15, %v899_v59  ;;  %v1188_v29 = vadd.f32 %v1124_v2, %v900_v11  ;;  %v841_v3 = vmul.f32 %v3522_v30, %v3531_v24  ;;  %v842_v12 = vmul.f32 %v3522_v30, %v3532_v54 }
 0x14a   :  { %v1415_v63 = vadd.f32 %v1332_v52, %v1331_v58  ;;  %v617_v49 = vadd.f32 %v553_v17, %v329_v23  ;;  %v618_v56 = vadd.f32 %v554_v31, %v330_v14  ;;  %v1129_v61 = vmul.f32 %v2682_v1, %v3533_v28 }
 0x14b   :  { %v1271_v43 = vadd.f32 %v2748_v41, %v1187_v21  ;;  %v1272_v33 = vadd.f32 %v2748_v41, %v1188_v29  ;;  %v1130_v7 = vmul.f32 %v2682_v1, %v3534_v6  ;;  %v325_v50 = vmul.f32 %v2656_v20, %v3516_v55 }
 0x14c   :  { %1416 = vadd.xlane.f32.xlu1 %v1415_v63  ;;  %v905_v5 = vadd.f32 %v841_v3, %v617_v49  ;;  %v906_v51 = vadd.f32 %v842_v12, %v618_v56  ;;  %v326_v22 = vmul.f32 %v2656_v20, %v3517_v4  ;;  %v549_v15 = vmul.f32 %v3526_v34, %v3518_v44 }
 0x14d   :  { %v1335_v48 = vmax.f32 %v1271_v43, 0.0  ;;  %v1336_v45 = vmax.f32 %v1272_v33, 0.0  ;;  %v550_v32 = vmul.f32 %v3526_v34, %v3520_v9  ;;  %v837_v2 = vmul.f32 %v2648_v37, %v3521_v13 }
 0x14e   :  { %v1193_v59 = vadd.f32 %v1129_v61, %v905_v5  ;;  %v1194_v11 = vadd.f32 %v1130_v7, %v906_v51  ;;  %v613_v23 = vadd.f32 %v549_v15, %v325_v50  ;;  %v838_v14 = vmul.f32 %v2648_v37, %v3523_v62 }
 0x14f   :  { %v1421_v58 = vadd.f32 %v1336_v45, %v1335_v48  ;;  %v614_v52 = vadd.f32 %v550_v32, %v326_v22  ;;  %v1125_v17 = vmul.f32 %v2706_v39, %v3524_v53  ;;  %v1126_v31 = vmul.f32 %v2706_v39, %v3525_v60 }
 0x150   :  { %v1277_v21 = vadd.f32 %v2704_v26, %v1193_v59  ;;  %v1278_v29 = vadd.f32 %v2704_v26, %v1194_v11  ;;  %v901_v3 = vadd.f32 %v837_v2, %v613_v23  ;;  %v327_v12 = vmul.f32 %v2680_v38, %v3516_v55 }
 0x151   :  { %1422 = vadd.xlane.f32.xlu0 %v1421_v58  ;;  %v902_v63 = vadd.f32 %v838_v14, %v614_v52  ;;  %v328_v49 = vmul.f32 %v2680_v38, %v3517_v4  ;;  %v551_v56 = vmul.f32 %v3507_v8, %v3518_v44  ;;  %v552_v61 = vmul.f32 %v3507_v8, %v3520_v9 }
 0x152   :  { %v1341_v43 = vmax.f32 %v1277_v21, 0.0  ;;  %v1342_v33 = vmax.f32 %v1278_v29, 0.0  ;;  %v1189_v7 = vadd.f32 %v1125_v17, %v901_v3  ;;  %v839_v50 = vmul.f32 %v3509_v10, %v3521_v13 }
 0x153   :  { %v1190_v5 = vadd.f32 %v1126_v31, %v902_v63  ;;  %v615_v51 = vadd.f32 %v551_v56, %v327_v12  ;;  %v616_v55 = vadd.f32 %v552_v61, %v328_v49  ;;  %v840_v22 = vmul.f32 %v3509_v10, %v3523_v62  ;;  %v3535_v56 = vld [vmem:[#allocation58_spill] sm:$0xff] }
 0x154   :  { %v1430_v15 = vadd.f32 %v1342_v33, %v1341_v43  ;;  %v1273_v4 = vadd.f32 %v2764_v47, %v1189_v7  ;;  %v1127_v44 = vmul.f32 %v2722_v25, %v3524_v53  ;;  %v1128_v9 = vmul.f32 %v2722_v25, %v3525_v60  ;;  %v3536_v43 = vld [vmem:[#allocation59_spill] sm:$0xff] }
 0x155   :  { %v1274_v48 = vadd.f32 %v2764_v47, %v1190_v5  ;;  %v903_v45 = vadd.f32 %v839_v50, %v615_v51  ;;  %v904_v32 = vadd.f32 %v840_v22, %v616_v55  ;;  %v331_v13 = vmul.f32 %v3485_v57, %v3527_v16  ;;  %v3537_v5 = vld [vmem:[#allocation52_spill] sm:$0xff]  ;;  %v3538_v55 = vld [vmem:[#allocation53_spill] sm:$0xff] }
 0x156   :  { %1431 = vadd.xlane.f32.xlu1 %v1430_v15  ;;  %v1337_v2 = vmax.f32 %v1273_v4, 0.0  ;;  %v332_v62 = vmul.f32 %v3485_v57, %v3528_v27  ;;  %v555_v59 = vmul.f32 %v3511_v46, %v3529_v0  ;;  %v556_v53 = vmul.f32 %v3511_v46, %v3530_v42 }
 0x157   :  { %v1338_v11 = vmax.f32 %v1274_v48, 0.0  ;;  %v1191_v60 = vadd.f32 %v1127_v44, %v903_v45  ;;  %v1192_v23 = vadd.f32 %v1128_v9, %v904_v32  ;;  %v843_v14 = vmul.f32 %v2620_v40, %v3531_v24  ;;  %v1817_v44 = vld [vmem:[#allocation3 + $0x38] sm:$0xff] }
 0x158   :  { %v619_v58 = vadd.f32 %v555_v59, %v331_v13  ;;  %v620_v52 = vadd.f32 %v556_v53, %v332_v62  ;;  %v844_v17 = vmul.f32 %v2620_v40, %v3532_v54  ;;  %v1131_v31 = vmul.f32 %v3515_v36, %v3533_v28  ;;  %v3539_v9 = vld [vmem:[#allocation18_spill] sm:$0xff]  ;;  %v3540_v45 = vld [vmem:[#allocation19_spill] sm:$0xff] }
 0x159   :  { %v1424_v21 = vadd.f32 %v1338_v11, %v1337_v2  ;;  %v1275_v29 = vadd.f32 %v2778_v19, %v1191_v60  ;;  %v1276_v3 = vadd.f32 %v2778_v19, %v1192_v23  ;;  %v1132_v12 = vmul.f32 %v3515_v36, %v3534_v6  ;;  %v3542_v23 = vld [vmem:[#allocation21_spill] sm:$0xff] }
 0x15a   :  { %v907_v63 = vadd.f32 %v843_v14, %v619_v58  ;;  %v908_v49 = vadd.f32 %v844_v17, %v620_v52  ;;  %v337_v61 = vmul.f32 %v3494_v18, %v3535_v56  ;;  %v338_v33 = vmul.f32 %v3494_v18, %v3536_v43  ;;  %v3541_v18 = vld [vmem:[#allocation20_spill] sm:$0xff] }
 0x15b   :  { %1425 = vadd.xlane.f32.xlu0 %v1424_v21  ;;  %v1339_v7 = vmax.f32 %v1275_v29, 0.0  ;;  %v1340_v50 = vmax.f32 %v1276_v3, 0.0  ;;  %v561_v51 = vmul.f32 %v3519_v35, %v3537_v5  ;;  %v562_v22 = vmul.f32 %v3519_v35, %v3538_v55 }
 0x15c   :  { %v1195_v15 = vadd.f32 %v1131_v31, %v907_v63  ;;  %v1196_v4 = vadd.f32 %v1132_v12, %v908_v49  ;;  %v692_v48 = vrot.slane %v1817_v44, %v3539_v9  ;;  %v696_v32 = vrot.slane %v1817_v44, %v3540_v45 }
 0x15d   :  { %v1427_v13 = vadd.f32 %v1340_v50, %v1339_v7  ;;  %v625_v2 = vadd.f32 %v561_v51, %v337_v61  ;;  %v626_v62 = vadd.f32 %v562_v22, %v338_v33  ;;  %v980_v59 = vrot.slane %v1817_v44, %v3541_v18 }
 0x15e   :  { %v1279_v53 = vadd.f32 %v2748_v41, %v1195_v15  ;;  %v1280_v11 = vadd.f32 %v2748_v41, %v1196_v4  ;;  %v3071_v60 = vrot.slane %v692_v48, %v3539_v9  ;;  %v3074_v35 = vrot.slane %v696_v32, %v3539_v9 }
 0x15f   :  { %1428 = vadd.xlane.f32.xlu1 %v1427_v13  ;;  %v984_v14 = vrot.slane %v1817_v44, %v3542_v23  ;;  %v3078_v58 = vrot.slane %v980_v59, %v3541_v18  ;;  %v333_v52 = vmul.f32 %v2656_v20, %v3527_v16  ;;  %v334_v17 = vmul.f32 %v2656_v20, %v3528_v27 }
 0x160   :  { %v1343_v31 = vmax.f32 %v1279_v53, 0.0  ;;  %v1344_v21 = vmax.f32 %v1280_v11, 0.0  ;;  %v849_v29 = vmul.f32 %v3522_v30, %v3071_v60  ;;  %v850_v3 = vmul.f32 %v3522_v30, %v3074_v35 }
 0x161   :  { %v3089_v12 = vrot.slane %v984_v14, %v3541_v18  ;;  %v1137_v63 = vmul.f32 %v2682_v1, %v3078_v58  ;;  %v557_v49 = vmul.f32 %v3526_v34, %v3529_v0  ;;  %v558_v61 = vmul.f32 %v3526_v34, %v3530_v42 }
 0x162   :  { %v1433_v33 = vadd.f32 %v1344_v21, %v1343_v31  ;;  %v913_v7 = vadd.f32 %v849_v29, %v625_v2  ;;  %v914_v50 = vadd.f32 %v850_v3, %v626_v62  ;;  %v845_v51 = vmul.f32 %v2648_v37, %v3531_v24 }
 0x163   :  { %v1138_v30 = vmul.f32 %v2682_v1, %v3089_v12  ;;  %v621_v22 = vadd.f32 %v557_v49, %v333_v52  ;;  %v622_v15 = vadd.f32 %v558_v61, %v334_v17  ;;  %v846_v4 = vmul.f32 %v2648_v37, %v3532_v54 }
 0x164   :  { %1434 = vadd.xlane.f32.xlu0 %v1433_v33  ;;  %v1201_v44 = vadd.f32 %v1137_v63, %v913_v7  ;;  %v1133_v9 = vmul.f32 %v2706_v39, %v3533_v28  ;;  %v1134_v48 = vmul.f32 %v2706_v39, %v3534_v6  ;;  %v335_v45 = vmul.f32 %v2680_v38, %v3527_v16 }
 0x165   :  { %v1202_v32 = vadd.f32 %v1138_v30, %v914_v50  ;;  %v909_v13 = vadd.f32 %v845_v51, %v621_v22  ;;  %v910_v2 = vadd.f32 %v846_v4, %v622_v15  ;;  %v336_v1 = vmul.f32 %v2680_v38, %v3528_v27 }
 0x166   :  { %v1285_v62 = vadd.f32 %v2704_v26, %v1201_v44  ;;  %v559_v18 = vmul.f32 %v3507_v8, %v3529_v0  ;;  %v560_v59 = vmul.f32 %v3507_v8, %v3530_v42  ;;  %v847_v53 = vmul.f32 %v3509_v10, %v3531_v24 }
 0x167   :  { %v1286_v11 = vadd.f32 %v2704_v26, %v1202_v32  ;;  %v1197_v16 = vadd.f32 %v1133_v9, %v909_v13  ;;  %v1198_v23 = vadd.f32 %v1134_v48, %v910_v2  ;;  %v848_v14 = vmul.f32 %v3509_v10, %v3532_v54 }
 0x168   :  { %v1349_v52 = vmax.f32 %v1285_v62, 0.0  ;;  %v623_v27 = vadd.f32 %v559_v18, %v335_v45  ;;  %v624_v17 = vadd.f32 %v560_v59, %v336_v1  ;;  %v1135_v31 = vmul.f32 %v2722_v25, %v3533_v28 }
 0x169   :  { %v1350_v0 = vmax.f32 %v1286_v11, 0.0  ;;  %v1281_v21 = vadd.f32 %v2764_v47, %v1197_v16  ;;  %v1282_v42 = vadd.f32 %v2764_v47, %v1198_v23  ;;  %v1136_v24 = vmul.f32 %v2722_v25, %v3534_v6 }
 0x16a   :  { %v911_v26 = vadd.f32 %v847_v53, %v623_v27  ;;  %v912_v29 = vadd.f32 %v848_v14, %v624_v17  ;;  %v339_v3 = vmul.f32 %v3485_v57, %v3535_v56  ;;  %v340_v54 = vmul.f32 %v3485_v57, %v3536_v43 }
 0x16b   :  { %v1442_v63 = vadd.f32 %v1350_v0, %v1349_v52  ;;  %v1345_v49 = vmax.f32 %v1281_v21, 0.0  ;;  %v1346_v61 = vmax.f32 %v1282_v42, 0.0  ;;  %v563_v28 = vmul.f32 %v3511_v46, %v3537_v5 }
 0x16c   :  { %v1199_v33 = vadd.f32 %v1135_v31, %v911_v26  ;;  %v1200_v7 = vadd.f32 %v1136_v24, %v912_v29  ;;  %v564_v50 = vmul.f32 %v3511_v46, %v3538_v55  ;;  %v851_v6 = vmul.f32 %v2620_v40, %v3071_v60 }
 0x16d   :  { %1443 = vadd.xlane.f32.xlu1 %v1442_v63  ;;  %v1436_v51 = vadd.f32 %v1346_v61, %v1345_v49  ;;  %v627_v30 = vadd.f32 %v563_v28, %v339_v3  ;;  %v852_v57 = vmul.f32 %v2620_v40, %v3074_v35  ;;  %v1139_v22 = vmul.f32 %v3515_v36, %v3078_v58 }
 0x16e   :  { %v1283_v15 = vadd.f32 %v2778_v19, %v1199_v33  ;;  %v1284_v4 = vadd.f32 %v2778_v19, %v1200_v7  ;;  %v628_v44 = vadd.f32 %v564_v50, %v340_v54  ;;  %v1140_v46 = vmul.f32 %v3515_v36, %v3089_v12 }
 0x16f   :  { %1437 = vadd.xlane.f32.xlu0 %v1436_v51  ;;  %v915_v9 = vadd.f32 %v851_v6, %v627_v30  ;;  %v343_v48 = vmul.f32 %v2680_v38, %v3535_v56  ;;  %v344_v45 = vmul.f32 %v2680_v38, %v3536_v43  ;;  %v567_v40 = vmul.f32 %v3507_v8, %v3537_v5  ;;  %v1672_v51 = vld [vmem:[#allocation9 + $0x18] sm:$0xff] }
 0x170   :  { %v1347_v32 = vmax.f32 %v1283_v15, 0.0  ;;  %v1348_v13 = vmax.f32 %v1284_v4, 0.0  ;;  %v916_v2 = vadd.f32 %v852_v57, %v628_v44  ;;  %v568_v1 = vmul.f32 %v3507_v8, %v3538_v55 }
 0x171   :  { %v1203_v62 = vadd.f32 %v1139_v22, %v915_v9  ;;  %v631_v18 = vadd.f32 %v567_v40, %v343_v48  ;;  %v855_v36 = vmul.f32 %v3509_v10, %v3071_v60  ;;  %v856_v59 = vmul.f32 %v3509_v10, %v3074_v35 }
 0x172   :  { %v1439_v53 = vadd.f32 %v1348_v13, %v1347_v32  ;;  %v1204_v11 = vadd.f32 %v1140_v46, %v916_v2  ;;  %v632_v38 = vadd.f32 %v568_v1, %v344_v45  ;;  %v1143_v16 = vmul.f32 %v2722_v25, %v3078_v58 }
 0x173   :  { %v1287_v23 = vadd.f32 %v2748_v41, %v1203_v62  ;;  %v919_v14 = vadd.f32 %v855_v36, %v631_v18  ;;  %v1144_v8 = vmul.f32 %v2722_v25, %v3089_v12  ;;  %v341_v52 = vmul.f32 %v2656_v20, %v3535_v56 }
 0x174   :  { %1440 = vadd.xlane.f32.xlu1 %v1439_v53  ;;  %v1288_v27 = vadd.f32 %v2748_v41, %v1204_v11  ;;  %v920_v17 = vadd.f32 %v856_v59, %v632_v38  ;;  %v342_v10 = vmul.f32 %v2656_v20, %v3536_v43  ;;  %v565_v31 = vmul.f32 %v3526_v34, %v3537_v5 }
 0x175   :  { %v1351_v0 = vmax.f32 %v1287_v23, 0.0  ;;  %v1207_v21 = vadd.f32 %v1143_v16, %v919_v14  ;;  %v566_v42 = vmul.f32 %v3526_v34, %v3538_v55  ;;  %v853_v25 = vmul.f32 %v2648_v37, %v3071_v60 }
 0x176   :  { %v1352_v24 = vmax.f32 %v1288_v27, 0.0  ;;  %v1208_v56 = vadd.f32 %v1144_v8, %v920_v17  ;;  %v629_v26 = vadd.f32 %v565_v31, %v341_v52  ;;  %v854_v41 = vmul.f32 %v2648_v37, %v3074_v35 }
 0x177   :  { %v1291_v29 = vadd.f32 %v2778_v19, %v1207_v21  ;;  %v630_v20 = vadd.f32 %v566_v42, %v342_v10  ;;  %v1141_v43 = vmul.f32 %v2706_v39, %v3078_v58  ;;  %v1142_v5 = vmul.f32 %v2706_v39, %v3089_v12  ;;  %v1669_v39 = vld [vmem:[#allocation9] sm:$0xff]  ;;  %v1670_v12 = vld [vmem:[#allocation9 + $0x8] sm:$0xff] }
 0x178   :  { %v1445_v3 = vadd.f32 %v1352_v24, %v1351_v0  ;;  %v1292_v34 = vadd.f32 %v2778_v19, %v1208_v56  ;;  %v917_v55 = vadd.f32 %v853_v25, %v629_v26  ;;  %v1671_v19 = vld [vmem:[#allocation9 + $0x10] sm:$0xff]  ;;  %v1969_v50 = vmov 0.0|0.0  }
 0x179   :  { %v1355_v60 = vmax.f32 %v1291_v29, 0.0  ;;  %v918_v54 = vadd.f32 %v854_v41, %v630_v20  ;;  %1789 = vmatprep.subr.bf16.mxu0 %v1969_v50  ;;  %v1790_v6 = vpack.c.bf16 %v1670_v12, %v1669_v39  ;;  %v1970_v30 = vmov 0.0   ;;  %v3544_v10 = vld [vmem:[#allocation17_spill] sm:$0xff] }
 0x17a   :  { %1446 = vadd.xlane.f32.xlu0 %v1445_v3  ;;  %v1356_v63 = vmax.f32 %v1292_v34, 0.0  ;;  %v1205_v49 = vadd.f32 %v1141_v43, %v917_v55  ;;  %92 = vst.msk [vmem:[#allocation2] sm:$0xff] %vm91_vm0, %v1970_v30  ;;  %v1793_v57 = vpack.c.bf16 %v1672_v51, %v1671_v19  ;;  %1786 = vmatprep.mubr.msk.f32.mxu0 %vm1971_vm1, %v1970_v30  ;;  %v3543_v23 = vlaneseq }
 0x17b   :  { %v1206_v61 = vadd.f32 %v1142_v5, %v918_v54  ;;  %1791 = vmatpush3.bf16.msra.mxu0 %v1790_v6 }
 0x17c   :  { %v1451_v37 = vadd.f32 %v1356_v63, %v1355_v60  ;;  %v1289_v35 = vadd.f32 %v2764_v47, %v1205_v49  ;;  %1792 = vmatprep.subr.bf16.mxu0 %v1969_v50  ;;  %v1487_v14 = vand.u32 127, %v3543_v23 }
 0x17d   :  { %v1290_v28 = vadd.f32 %v2764_v47, %v1206_v61 }
 0x17e   :  { %1452 = vadd.xlane.f32.xlu1 %v1451_v37  ;;  %v1353_v58 = vmax.f32 %v1289_v35, 0.0  ;;  %v1492_v27 = vadd.s32 4294967288, %v1487_v14  ;;  %v1499_v17 = vadd.s32 4294967280, %v1487_v14  ;;  %v3204_v31 = vsub.s32 %v1487_v14, %v3544_v10 }
 0x17f   :  { %v1354_v33 = vmax.f32 %v1290_v28, 0.0  ;;  %1794 = vmatpush3.bf16.msra.mxu0 %v1793_v57  ;;  %v1506_v25 = vadd.s32 4294967272, %v1487_v14 }
 0x180   :  { %v3207_v0 = vsub.s32 %v1492_v27, %v3544_v10  ;;  %v3212_v42 = vsub.s32 %v1499_v17, %v3544_v10 }
 0x181   :  { %v1448_v7 = vadd.f32 %v1354_v33, %v1353_v58  ;;  %v3220_v43 = vsub.s32 %v1506_v25, %v3544_v10 }
 0x183   :  { %1449 = vadd.xlane.f32.xlu0 %v1448_v7 }
 0x192   :  { %v1360_v22 = vpop.xlane.xlu1 %1359 }
 0x193   :  { %v1491_v5 = vrot.slane %v1360_v22, %v3204_v31 }
 0x19b   :  { %v1363_v47 = vpop.xlane.xlu0 %1362  ;;  %v1375_v15 = vpop.xlane.xlu1 %1374 }
 0x19c   :  { %v1496_v26 = vrot.slane %v1363_v47, %v3207_v0  ;;  %v1520_v41 = vrot.slane %v1375_v15, %v3207_v0 }
 0x19e   :  { %v1498_v63 = vsel %vm1497_vm2, %v1496_v26, %v1491_v5  ;;  %v1357_v5 = vld [vmem:[#allocation2] sm:$0xff] }
 0x19f   :  { %v1372_v4 = vpop.xlane.xlu0 %1371  ;;  %v1378_v44 = vpop.xlane.xlu1 %1377 }
 0x1a0   :  { %v1516_v56 = vrot.slane %v1372_v4, %v3204_v31  ;;  %v1525_v29 = vrot.slane %v1378_v44, %v3212_v42 }
 0x1a2   :  { %v1521_v3 = vsel %vm1497_vm2, %v1520_v41, %v1516_v56 }
 0x1a3   :  { %v1366_v46 = vpop.xlane.xlu0 %1365  ;;  %v1387_v9 = vpop.xlane.xlu1 %1386  ;;  %v1526_v61 = vsel %vm1504_vm3, %v1525_v29, %v1521_v3 }
 0x1a4   :  { %v1503_v20 = vrot.slane %v1366_v46, %v3212_v42  ;;  %v1539_v49 = vrot.slane %v1387_v9, %v3207_v0 }
 0x1a6   :  { %v1505_v37 = vsel %vm1504_vm3, %v1503_v20, %v1498_v63 }
 0x1a7   :  { %v1384_v48 = vpop.xlane.xlu0 %1383  ;;  %v3184_v45 = vpop.xlane.xlu1 %1380 }
 0x1a8   :  { %v1535_v34 = vrot.slane %v1384_v48, %v3204_v31  ;;  %v1530_v35 = vrot.slane %v3184_v45, %v3220_v43 }
 0x1aa   :  { %v1540_v58 = vsel %vm1497_vm2, %v1539_v49, %v1535_v34 }
 0x1ab   :  { %v3186_v40 = vpop.xlane.xlu0 %1368 }
 0x1ac   :  { %v1396_v32 = vpop.xlane.xlu1 %1395  ;;  %v1510_v33 = vrot.slane %v3186_v40, %v3220_v43 }
 0x1ad   :  { %v1554_v12 = vrot.slane %v1396_v32, %v3204_v31 }
 0x1b2   :  { %v1390_v13 = vpop.xlane.xlu0 %1389 }
 0x1b3   :  { %v1544_v60 = vrot.slane %v1390_v13, %v3212_v42  ;;  %v1512_v13 = vsel %vm1511_vm4, %v1510_v33, %v1505_v37 }
 0x1b5   :  { %v1545_v19 = vsel %vm1504_vm3, %v1544_v60, %v1540_v58 }
 0x1b7   :  { %v3188_v2 = vpop.xlane.xlu1 %1392 }
 0x1b8   :  { %v1549_v51 = vrot.slane %v3188_v2, %v3220_v43 }
 0x1b9   :  { %v1399_v1 = vpop.xlane.xlu0 %1398 }
 0x1ba   :  { %v1558_v28 = vrot.slane %v1399_v1, %v3207_v0 }
 0x1bc   :  { %v3190_v62 = vpop.xlane.xlu1 %1407  ;;  %v1559_v15 = vsel %vm1497_vm2, %v1558_v28, %v1554_v12 }
 0x1bd   :  { %v1573_v30 = vrot.slane %v3190_v62, %v3204_v31 }
 0x1c2   :  { %v1402_v18 = vpop.xlane.xlu0 %1401 }
 0x1c3   :  { %v1563_v7 = vrot.slane %v1402_v18, %v3212_v42  ;;  %v1550_v18 = vsel %vm1511_vm4, %v1549_v51, %v1545_v19 }
 0x1c5   :  { %v1564_v48 = vsel %vm1504_vm3, %v1563_v7, %v1559_v15 }
 0x1c7   :  { %v3192_v36 = vpop.xlane.xlu1 %1404 }
 0x1c8   :  { %v1568_v4 = vrot.slane %v3192_v36, %v3220_v43 }
 0x1cb   :  { %v1411_v59 = vpop.xlane.xlu0 %1410 }
 0x1cc   :  { %v1577_v39 = vrot.slane %v1411_v59, %v3207_v0 }
 0x1ce   :  { %v1578_v45 = vsel %vm1497_vm2, %v1577_v39, %v1573_v30 }
 0x1d0   :  { %v3194_v53 = vpop.xlane.xlu1 %1419 }
 0x1d1   :  { %v1592_v44 = vrot.slane %v3194_v53, %v3204_v31 }
 0x1d5   :  { %v3196_v11 = vpop.xlane.xlu0 %1413 }
 0x1d6   :  { %v1582_v50 = vrot.slane %v3196_v11, %v3212_v42  ;;  %v1531_v11 = vsel %vm1511_vm4, %v1530_v35, %v1526_v61 }
 0x1d7   :  { %v1647_v14 = vsel %vm1646_vm5, %v1531_v11, %v1512_v13 }
 0x1d8   :  { %v1583_v2 = vsel %vm1504_vm3, %v1582_v50, %v1578_v45  ;;  %v1649_v27 = vsel %vm1648_vm6, %v1550_v18, %v1647_v14 }
 0x1d9   :  { %v3198_v38 = vpop.xlane.xlu1 %1416 }
 0x1da   :  { %v1587_v40 = vrot.slane %v3198_v38, %v3220_v43  ;;  %v1569_v38 = vsel %vm1511_vm4, %v1568_v4, %v1564_v48 }
 0x1db   :  { %v1651_v25 = vsel %vm1650_vm7, %v1569_v38, %v1649_v27 }
 0x1de   :  { %v1423_v16 = vpop.xlane.xlu0 %1422 }
 0x1df   :  { %v1596_v6 = vrot.slane %v1423_v16, %v3207_v0 }
 0x1e1   :  { %v1597_v1 = vsel %vm1497_vm2, %v1596_v6, %v1592_v44 }
 0x1e3   :  { %v3201_v8 = vpop.xlane.xlu1 %1431 }
 0x1e4   :  { %v1611_v32 = vrot.slane %v3201_v8, %v3204_v31  ;;  %v1588_v8 = vsel %vm1511_vm4, %v1587_v40, %v1583_v2 }
 0x1e5   :  { %v1653_v56 = vsel %vm1652_vm8, %v1588_v8, %v1651_v25 }
 0x1e8   :  { %v1426_v52 = vpop.xlane.xlu0 %1425 }
 0x1e9   :  { %v1601_v57 = vrot.slane %v1426_v52, %v3212_v42 }
 0x1eb   :  { %v1602_v36 = vsel %vm1504_vm3, %v1601_v57, %v1597_v1 }
 0x1ec   :  { %v3209_v21 = vpop.xlane.xlu1 %1428 }
 0x1ed   :  { %v1606_v62 = vrot.slane %v3209_v21, %v3220_v43 }
 0x1ef   :  { %v1607_v17 = vsel %vm1511_vm4, %v1606_v62, %v1602_v36 }
 0x1f0   :  { %v1655_v29 = vsel %vm1654_vm9, %v1607_v17, %v1653_v56 }
 0x1f1   :  { %v1435_v24 = vpop.xlane.xlu0 %1434 }
 0x1f2   :  { %v1615_v47 = vrot.slane %v1435_v24, %v3207_v0 }
 0x1f4   :  { %v1616_v59 = vsel %vm1497_vm2, %v1615_v47, %v1611_v32 }
 0x1fa   :  { %v3225_v55 = vpop.xlane.xlu1 %1443 }
 0x1fb   :  { %v1630_v10 = vrot.slane %v3225_v55, %v3204_v31 }
 0x1fc   :  { %v1438_v54 = vpop.xlane.xlu0 %1437 }
 0x1fd   :  { %v1620_v46 = vrot.slane %v1438_v54, %v3212_v42 }
 0x1ff   :  { %v1621_v16 = vsel %vm1504_vm3, %v1620_v46, %v1616_v59 }
 0x201   :  { %v1441_v22 = vpop.xlane.xlu1 %1440 }
 0x202   :  { %v1625_v53 = vrot.slane %v1441_v22, %v3220_v43 }
 0x207   :  { %v1447_v9 = vpop.xlane.xlu0 %1446 }
 0x208   :  { %v1634_v23 = vrot.slane %v1447_v9, %v3207_v0  ;;  %v1626_v0 = vsel %vm1511_vm4, %v1625_v53, %v1621_v16 }
 0x209   :  { %v1657_v3 = vsel %vm1656_vm10, %v1626_v0, %v1655_v29 }
 0x20a   :  { %v1635_v26 = vsel %vm1497_vm2, %v1634_v23, %v1630_v10 }
 0x20b   :  { %v1453_v52 = vpop.xlane.xlu1 %1452 }
 0x20c   :  { %v1644_v41 = vrot.slane %v1453_v52, %v3220_v43 }
 0x210   :  { %v1450_v21 = vpop.xlane.xlu0 %1449 }
 0x211   :  { %v1639_v24 = vrot.slane %v1450_v21, %v3212_v42  ;;  %v1771_v42 = vld [vmem:[#allocation11] ss:$0 sm:$0xff] }
 0x213   :  { %v1640_v20 = vsel %vm1504_vm3, %v1639_v24, %v1635_v26 }
 0x214   :  { %v1645_v31 = vsel %vm1511_vm4, %v1644_v41, %v1640_v20 }
 0x215   :  { %v1659_v34 = vsel %vm1658_vm11, %v1645_v31, %v1657_v3 }
 0x216   :  { %v1661_v55 = vadd.f32 %v1659_v34, %v1357_v5 }
 0x218   :  { %1663 = vst.msk [vmem:[#allocation2] sm:$0xff] %vm91_vm0, %v1661_v55 }
 0x21f   :  { %v1667_v60 = vld [vmem:[#allocation2] sm:$0xff] }
 0x220   :  { %v1668_v54 = vmul.f32 0.00390625, %v1667_v60 }
 0x222   :  { %1787 = vmatmul.mubr.msk.f32.vlgmr.msra.gmra.mrb[0].mxu0 %vm91_vm0, %v1668_v54 }
 0x2f5   :  { %v1749_v43 = vpop.f32.mrb[0].mxu0 }
 0x2f6   :  { %v1750_v63 = vadd.f32 %v1771_v42, %v1749_v43  ;;  %v1788_v49 = vpop.f32.mrb[1].mxu0 }
 0x2f8   :  { %1753 = vst [vmem:[#allocation12] sm:$0xff] %v1750_v63 }
 0x2f9   :  { %1939 = shalt.err (!%p1936_p2)
}
 0x2fa   :  { %s1940_s21 = scalar_lea.hbm %s3308_s5, 128 }
 0x2fb   :  { %p1941_p3 = scmp.ne.s32.totalorder %s3308_s5, %s1940_s21  ;;  %p1944_p4 = scmp.lt.u32.totalorder %s1940_s21, %s3308_s5 }
 0x2fd   :  { %p1946_p5 = pnand %p1944_p4, %p1941_p3 }
 0x2ff   :  { %1949 = shalt.err (!%p1946_p5)
}
 0x300   :  { %1763 = dma.vmem_to_hbm [thread:$0]  %s1761_s22, 128, %s3308_s5, [#allocation5]  }
 0x301   :  { %1956 = dma.done.wait [#allocation5], 128  }
 0x302   :  { %1957 = vsyncadd [#allocation5], 4294967168 }
 0x303   :  { %1767 = vsyncpa [#allocation4], 1 }
 0x304   :  { %1768 = vsyncpa [#allocation7], 1 }
 0x305   :  { %1769 = vsyncpa [#allocation10], 1 }
 0x306   :  { %1770 = vsyncpa [#allocation5], 1 }

</bundles_post_ra>
